<compile_context>
chip_gen: v7x
topology: tpu7x:2x2x1
jax: 0.10.0
libtpu: 0.0.40
codegen_flags: <defaults>
</compile_context>

<pallas_src>
import jax
import jax.numpy as jnp
from jax.experimental import pallas as pl
from jax.experimental.pallas import tpu as pltpu

# ---- model config (small, consistent with the module's forward) ----
BATCH = 2
SEQ = 8
HIDDEN = 32
NUM_HEADS = 4
HEAD_DIM = HIDDEN // NUM_HEADS
FFN = 64
NUM_LAYERS = 2
VOCAB = 100
MAX_POS = 16
NUM_CLASSES = 3
QKV_PAD = 128          # lane-dense fused QKV weight width (3*HIDDEN = 96 -> 128)
HEAD_PAD = 128         # lane-dense padded width for the logits store
LOGIT_ROWS = 8         # sublane-dense padded row count for the logits store
LN_EPS = 1e-12


def _layernorm(x, gamma, beta):
    # x: (R, H) f32, gamma/beta: (1, H) f32 -- statistics kept in f32 on purpose.
    mean = jnp.mean(x, axis=-1, keepdims=True)
    var = jnp.mean((x - mean) ** 2, axis=-1, keepdims=True)
    inv = jax.lax.rsqrt(var + LN_EPS)
    return (x - mean) * inv * gamma + beta


def _softmax_lastaxis(scores):
    m = jnp.max(scores, axis=-1, keepdims=True)
    e = jnp.exp(scores - m)
    denom = jnp.sum(e, axis=-1, keepdims=True)
    # EUP reciprocal instead of a VALU divide.
    return e * pl.reciprocal(denom, approx=True)


# ---------------- fused Pallas kernel (whole forward, single launch) ----------------

def fused_encoder_head_kernel(
        ids_ref, mask_ref, tok_ref, pos_ref, emb_g_ref, emb_b_ref,
        wqkv_ref, bqkv_ref, wo_ref, bo_ref, ln1g_ref, ln1b_ref,
        w1_ref, b1_ref, w2_ref, b2_ref, ln2g_ref, ln2b_ref,
        hw_ref, hb_ref, o_ref):
    B, S = mask_ref.shape
    H = tok_ref.shape[1]
    BS = B * S
    NH, D = NUM_HEADS, HEAD_DIM
    scale = 1.0 / (D ** 0.5)

    # ---- in-kernel embedding lookup: one-hot @ vocab-table MXU gather ----
    ids = ids_ref[...]                                                 # (B*S, 1) int32
    vocab_iota = jax.lax.broadcasted_iota(jnp.int32, (BS, VOCAB), 1)
    one_hot = (ids == vocab_iota).astype(jnp.float32)                  # (B*S, V)
    x = jnp.dot(one_hot, tok_ref[...], preferred_element_type=jnp.float32)   # (B*S, H)
    x = x + jnp.tile(pos_ref[0:S, :], (B, 1))                          # + position embeddings
    x = _layernorm(x, emb_g_ref[...], emb_b_ref[...])

    # ---- in-kernel additive attention mask, hoisted out of the layer loop ----
    maskf = mask_ref[...].astype(jnp.float32)                          # (B, S)
    neg_mask = ((1.0 - maskf) * -1e9)[:, None, :]                      # (B, 1, S)

    for l in range(NUM_LAYERS):                                        # static unroll
        # ---- fused QKV: ONE lane-dense (B*S, 128) matmul instead of three ----
        qkv = jnp.dot(x.astype(jnp.bfloat16), wqkv_ref[l],
                      preferred_element_type=jnp.float32) + bqkv_ref[l]      # (B*S, 128) f32
        wo_l = wo_ref[l]                                                # (NH, D, H) bf16

        attn_out = bo_ref[l]                                            # (1, H) f32, broadcasts
        for h in range(NH):                                             # static; batched over B
            q_h = qkv[:, h * D:(h + 1) * D].reshape(B, S, D)
            k_h = qkv[:, H + h * D:H + (h + 1) * D].reshape(B, S, D)
            v_h = qkv[:, 2 * H + h * D:2 * H + (h + 1) * D].reshape(B, S, D)
            # Single-batch-dim contractions (documented-safe Mosaic pattern).
            scores = jnp.einsum('bqd,bkd->bqk', q_h, k_h,
                                preferred_element_type=jnp.float32) * scale
            p = _softmax_lastaxis(scores + neg_mask)                    # (B, S, S) f32
            ctx = jnp.einsum('bqk,bkd->bqd', p, v_h,
                             preferred_element_type=jnp.float32)        # (B, S, D)
            # Fold this head's slice of the output projection: no concat, no masked stores.
            attn_out = attn_out + jnp.dot(
                ctx.reshape(BS, D).astype(jnp.bfloat16), wo_l[h],
                preferred_element_type=jnp.float32)
        x = _layernorm(x + attn_out, ln1g_ref[l], ln1b_ref[l])

        # ---- feed-forward ----
        hdn = jnp.dot(x.astype(jnp.bfloat16), w1_ref[l],
                      preferred_element_type=jnp.float32) + b1_ref[l]
        hdn = jax.nn.gelu(hdn)   # TODO(synk): tanh-approx GELU vs HF's exact erf GELU
        ffn = jnp.dot(hdn.astype(jnp.bfloat16), w2_ref[l],
                      preferred_element_type=jnp.float32) + b2_ref[l]
        x = _layernorm(x + ffn, ln2g_ref[l], ln2b_ref[l])

    # ---- classification head on the [CLS] token; fully dense (8, 128) store ----
    cls = jnp.concatenate([x[b * S:b * S + 1, :] for b in range(B)], axis=0)   # (B, H)
    logits = jnp.dot(cls, hw_ref[...], preferred_element_type=jnp.float32) + hb_ref[...]
    o_ref[...] = jnp.tile(logits, (o_ref.shape[0] // B, 1))             # (8, 128) dense


# ---------------- parameter init (deterministic, synthetic; fused layouts built ONCE) ----------------

def init_params(key):
    def nrm(k, shape, scale=0.02):
        return scale * jax.random.normal(k, shape, dtype=jnp.float32)

    keys = iter(jax.random.split(key, 10))
    L, H, F, NH, D = NUM_LAYERS, HIDDEN, FFN, NUM_HEADS, HEAD_DIM

    # Per-matrix weights (as a real checkpoint would provide them) ...
    wq, wk, wv = (nrm(next(keys), (L, H, H)) for _ in range(3))
    bq = bk = bv = jnp.zeros((L, 1, H), jnp.float32)
    wo = nrm(next(keys), (L, H, H))
    head_w = nrm(next(keys), (H, NUM_CLASSES))
    head_b = jnp.zeros((1, NUM_CLASSES), jnp.float32)

    # ... fused / padded / bf16 layouts built once here (NOT per jitted forward).
    wqkv = jnp.concatenate([wq, wk, wv], axis=-1)                       # (L, H, 3H)
    wqkv = jnp.pad(wqkv, ((0, 0), (0, 0), (0, QKV_PAD - 3 * H))).astype(jnp.bfloat16)
    bqkv = jnp.pad(jnp.concatenate([bq, bk, bv], axis=-1),
                   ((0, 0), (0, 0), (0, QKV_PAD - 3 * H)))              # (L, 1, 128) f32
    wo_heads = wo.reshape(L, NH, D, H).astype(jnp.bfloat16)             # head-major, no slicing
    head_w_pad = jnp.zeros((H, HEAD_PAD), jnp.float32).at[:, :NUM_CLASSES].set(head_w)
    head_b_pad = jnp.zeros((1, HEAD_PAD), jnp.float32).at[:, :NUM_CLASSES].set(head_b)

    return {
        "tok_emb": nrm(next(keys), (VOCAB, H)),
        "pos_emb": nrm(next(keys), (MAX_POS, H)),
        "emb_ln_g": jnp.ones((1, H), jnp.float32),
        "emb_ln_b": jnp.zeros((1, H), jnp.float32),
        "wqkv": wqkv, "bqkv": bqkv,
        "wo": wo_heads, "bo": jnp.zeros((L, 1, H), jnp.float32),
        "ln1_g": jnp.ones((L, 1, H), jnp.float32), "ln1_b": jnp.zeros((L, 1, H), jnp.float32),
        "w1": nrm(next(keys), (L, H, F)).astype(jnp.bfloat16), "b1": jnp.zeros((L, 1, F), jnp.float32),
        "w2": nrm(next(keys), (L, F, H)).astype(jnp.bfloat16), "b2": jnp.zeros((L, 1, H), jnp.float32),
        "ln2_g": jnp.ones((L, 1, H), jnp.float32), "ln2_b": jnp.zeros((L, 1, H), jnp.float32),
        "head_w_pad": head_w_pad, "head_b_pad": head_b_pad,
    }


# ---------------- full forward (single fused pallas_call) ----------------

@jax.jit
def nlp_classification_forward(input_ids, attention_mask, params):
    B, S = input_ids.shape
    ids_col = input_ids.reshape(B * S, 1).astype(jnp.int32)   # column layout for in-kernel one-hot
    mask = attention_mask.astype(jnp.int32)

    args = (ids_col, mask,
            params["tok_emb"], params["pos_emb"], params["emb_ln_g"], params["emb_ln_b"],
            params["wqkv"], params["bqkv"], params["wo"], params["bo"],
            params["ln1_g"], params["ln1_b"], params["w1"], params["b1"],
            params["w2"], params["b2"], params["ln2_g"], params["ln2_b"],
            params["head_w_pad"], params["head_b_pad"])

    logits_pad = pl.pallas_call(
        fused_encoder_head_kernel,
        out_shape=jax.ShapeDtypeStruct((LOGIT_ROWS, HEAD_PAD), jnp.float32),
        in_specs=[pl.BlockSpec(memory_space=pltpu.MemorySpace.VMEM)] * len(args),
        out_specs=pl.BlockSpec(memory_space=pltpu.MemorySpace.VMEM),
    )(*args)

    return logits_pad[:B, :NUM_CLASSES]


if __name__ == "__main__":
    key = jax.random.PRNGKey(0)
    k_ids, _ = jax.random.split(key)
    input_ids = jax.random.randint(k_ids, (BATCH, SEQ), 0, VOCAB, dtype=jnp.int32)
    # second example has 2 padded positions
    attention_mask = jnp.array(
        [[1, 1, 1, 1, 1, 1, 1, 1],
         [1, 1, 1, 1, 1, 1, 0, 0]], dtype=jnp.int32)

    params = init_params(jax.random.PRNGKey(42))

    logits = nlp_classification_forward(input_ids, attention_mask, params)
    logits = jax.block_until_ready(logits)
    assert logits.shape == (BATCH, NUM_CLASSES)
    assert bool(jnp.all(jnp.isfinite(logits)))
    print("KERNEL_OK")
</pallas_src>

<mosaic_0001>
module attributes {stable_mosaic.version = 11 : i64} {
  func.func @fused_encoder_head_kernel(%arg0: memref<16x1xi32, #tpu.memory_space<vmem>>, %arg1: memref<2x8xi32, #tpu.memory_space<vmem>>, %arg2: memref<100x32xf32, #tpu.memory_space<vmem>>, %arg3: memref<16x32xf32, #tpu.memory_space<vmem>>, %arg4: memref<1x32xf32, #tpu.memory_space<vmem>>, %arg5: memref<1x32xf32, #tpu.memory_space<vmem>>, %arg6: memref<2x32x128xbf16, #tpu.memory_space<vmem>>, %arg7: memref<2x1x128xf32, #tpu.memory_space<vmem>>, %arg8: memref<2x4x8x32xbf16, #tpu.memory_space<vmem>>, %arg9: memref<2x1x32xf32, #tpu.memory_space<vmem>>, %arg10: memref<2x1x32xf32, #tpu.memory_space<vmem>>, %arg11: memref<2x1x32xf32, #tpu.memory_space<vmem>>, %arg12: memref<2x32x64xbf16, #tpu.memory_space<vmem>>, %arg13: memref<2x1x64xf32, #tpu.memory_space<vmem>>, %arg14: memref<2x64x32xbf16, #tpu.memory_space<vmem>>, %arg15: memref<2x1x32xf32, #tpu.memory_space<vmem>>, %arg16: memref<2x1x32xf32, #tpu.memory_space<vmem>>, %arg17: memref<2x1x32xf32, #tpu.memory_space<vmem>>, %arg18: memref<32x128xf32, #tpu.memory_space<vmem>>, %arg19: memref<1x128xf32, #tpu.memory_space<vmem>>, %arg20: memref<8x128xf32, #tpu.memory_space<vmem>>) attributes {dimension_semantics = [], scalar_prefetch = 0 : i64, scratch_operands = 0 : i64, tpu.core_type = #tpu.core_type<tc>} {
    %c0 = arith.constant 0 : index
    %c0_0 = arith.constant 0 : index
    %0 = vector.load %arg0[%c0, %c0_0] : memref<16x1xi32, #tpu.memory_space<vmem>>, vector<16x1xi32>
    %1 = tpu.iota {dimensions = array<i32: 1>} : vector<16x100xi32>
    %2 = vector.broadcast %0 : vector<16x1xi32> to vector<16x100xi32>
    %3 = arith.cmpi eq, %2, %1 : vector<16x100xi32>
    %4 = arith.extui %3 : vector<16x100xi1> to vector<16x100xi32>
    %5 = arith.sitofp %4 : vector<16x100xi32> to vector<16x100xf32>
    %c0_1 = arith.constant 0 : index
    %c0_2 = arith.constant 0 : index
    %6 = vector.load %arg2[%c0_1, %c0_2] : memref<100x32xf32, #tpu.memory_space<vmem>>, vector<100x32xf32>
    %cst = arith.constant dense<0.000000e+00> : vector<16x32xf32>
    %7 = tpu.matmul %5, %6, %cst {dimension_numbers = #tpu.dot_dimension_numbers<[1], [0], [0], [1], [0, 0, 1, 1], [], []>} : vector<16x100xf32>, vector<100x32xf32>, vector<16x32xf32> -> vector<16x32xf32>
    %c0_3 = arith.constant 0 : index
    %c0_4 = arith.constant 0 : index
    %8 = vector.load %arg3[%c0_3, %c0_4] : memref<16x32xf32, #tpu.memory_space<vmem>>, vector<8x32xf32>
    %9 = tpu.concatenate %8, %8 in 0 : vector<8x32xf32>, vector<8x32xf32> -> vector<16x32xf32>
    %10 = arith.addf %7, %9 : vector<16x32xf32>
    %c0_5 = arith.constant 0 : index
    %c0_6 = arith.constant 0 : index
    %11 = vector.load %arg4[%c0_5, %c0_6] : memref<1x32xf32, #tpu.memory_space<vmem>>, vector<1x32xf32>
    %c0_7 = arith.constant 0 : index
    %c0_8 = arith.constant 0 : index
    %12 = vector.load %arg5[%c0_7, %c0_8] : memref<1x32xf32, #tpu.memory_space<vmem>>, vector<1x32xf32>
    %cst_9 = arith.constant dense<0.000000e+00> : vector<16xf32>
    %13 = vector.multi_reduction <add>, %10, %cst_9 [1] : vector<16x32xf32> to vector<16xf32>
    %14 = vector.shape_cast %13 : vector<16xf32> to vector<16x1xf32>
    %cst_10 = arith.constant 3.200000e+01 : f32
    %15 = vector.broadcast %cst_10 : f32 to vector<16x1xf32>
    %16 = arith.divf %14, %15 : vector<16x1xf32>
    %17 = vector.broadcast %16 : vector<16x1xf32> to vector<16x32xf32>
    %18 = arith.subf %10, %17 : vector<16x32xf32>
    %19 = arith.mulf %18, %18 : vector<16x32xf32>
    %cst_11 = arith.constant dense<0.000000e+00> : vector<16xf32>
    %20 = vector.multi_reduction <add>, %19, %cst_11 [1] : vector<16x32xf32> to vector<16xf32>
    %21 = vector.shape_cast %20 : vector<16xf32> to vector<16x1xf32>
    %cst_12 = arith.constant 3.200000e+01 : f32
    %22 = vector.broadcast %cst_12 : f32 to vector<16x1xf32>
    %23 = arith.divf %21, %22 : vector<16x1xf32>
    %cst_13 = arith.constant 9.99999996E-13 : f32
    %24 = vector.broadcast %cst_13 : f32 to vector<16x1xf32>
    %25 = arith.addf %23, %24 : vector<16x1xf32>
    %26 = math.rsqrt %25 : vector<16x1xf32>
    %27 = vector.broadcast %16 : vector<16x1xf32> to vector<16x32xf32>
    %28 = arith.subf %10, %27 : vector<16x32xf32>
    %29 = vector.broadcast %26 : vector<16x1xf32> to vector<16x32xf32>
    %30 = arith.mulf %28, %29 : vector<16x32xf32>
    %31 = vector.broadcast %11 : vector<1x32xf32> to vector<16x32xf32>
    %32 = arith.mulf %30, %31 : vector<16x32xf32>
    %33 = vector.broadcast %12 : vector<1x32xf32> to vector<16x32xf32>
    %34 = arith.addf %32, %33 : vector<16x32xf32>
    %c0_14 = arith.constant 0 : index
    %c0_15 = arith.constant 0 : index
    %35 = vector.load %arg1[%c0_14, %c0_15] : memref<2x8xi32, #tpu.memory_space<vmem>>, vector<2x8xi32>
    %36 = arith.sitofp %35 : vector<2x8xi32> to vector<2x8xf32>
    %cst_16 = arith.constant 1.000000e+00 : f32
    %37 = vector.broadcast %cst_16 : f32 to vector<2x8xf32>
    %38 = arith.subf %37, %36 : vector<2x8xf32>
    %cst_17 = arith.constant -1.000000e+09 : f32
    %39 = vector.broadcast %cst_17 : f32 to vector<2x8xf32>
    %40 = arith.mulf %38, %39 : vector<2x8xf32>
    %41 = vector.shape_cast %40 : vector<2x8xf32> to vector<2x1x8xf32>
    %42 = arith.truncf %34 : vector<16x32xf32> to vector<16x32xbf16>
    %c0_18 = arith.constant 0 : index
    %c0_19 = arith.constant 0 : index
    %c0_20 = arith.constant 0 : index
    %43 = vector.load %arg6[%c0_18, %c0_19, %c0_20] : memref<2x32x128xbf16, #tpu.memory_space<vmem>>, vector<1x32x128xbf16>
    %44 = vector.shape_cast %43 : vector<1x32x128xbf16> to vector<32x128xbf16>
    %cst_21 = arith.constant dense<0.000000e+00> : vector<16x128xf32>
    %45 = tpu.matmul %42, %44, %cst_21 {dimension_numbers = #tpu.dot_dimension_numbers<[1], [0], [0], [1], [0, 0, 1, 1], [], []>} : vector<16x32xbf16>, vector<32x128xbf16>, vector<16x128xf32> -> vector<16x128xf32>
    %c0_22 = arith.constant 0 : index
    %c0_23 = arith.constant 0 : index
    %c0_24 = arith.constant 0 : index
    %46 = vector.load %arg7[%c0_22, %c0_23, %c0_24] : memref<2x1x128xf32, #tpu.memory_space<vmem>>, vector<1x1x128xf32>
    %47 = vector.shape_cast %46 : vector<1x1x128xf32> to vector<1x128xf32>
    %48 = vector.broadcast %47 : vector<1x128xf32> to vector<16x128xf32>
    %49 = arith.addf %45, %48 : vector<16x128xf32>
    %c0_25 = arith.constant 0 : index
    %c0_26 = arith.constant 0 : index
    %c0_27 = arith.constant 0 : index
    %c0_28 = arith.constant 0 : index
    %50 = vector.load %arg8[%c0_25, %c0_26, %c0_27, %c0_28] : memref<2x4x8x32xbf16, #tpu.memory_space<vmem>>, vector<1x4x8x32xbf16>
    %51 = vector.shape_cast %50 : vector<1x4x8x32xbf16> to vector<4x8x32xbf16>
    %c0_29 = arith.constant 0 : index
    %c0_30 = arith.constant 0 : index
    %c0_31 = arith.constant 0 : index
    %52 = vector.load %arg9[%c0_29, %c0_30, %c0_31] : memref<2x1x32xf32, #tpu.memory_space<vmem>>, vector<1x1x32xf32>
    %53 = vector.shape_cast %52 : vector<1x1x32xf32> to vector<1x32xf32>
    %54 = vector.extract_strided_slice %49 {offsets = [0, 0], sizes = [16, 8], strides = [1, 1]} : vector<16x128xf32> to vector<16x8xf32>
    %55 = vector.shape_cast %54 : vector<16x8xf32> to vector<2x8x8xf32>
    %56 = vector.extract_strided_slice %49 {offsets = [0, 32], sizes = [16, 8], strides = [1, 1]} : vector<16x128xf32> to vector<16x8xf32>
    %57 = vector.shape_cast %56 : vector<16x8xf32> to vector<2x8x8xf32>
    %58 = vector.extract_strided_slice %49 {offsets = [0, 64], sizes = [16, 8], strides = [1, 1]} : vector<16x128xf32> to vector<16x8xf32>
    %59 = vector.shape_cast %58 : vector<16x8xf32> to vector<2x8x8xf32>
    "tpu.trace_start"() <{level = 10 : i32, message = "bqd,bkd->bqk"}> : () -> ()
    %cst_32 = arith.constant dense<0.000000e+00> : vector<2x8x8xf32>
    %60 = tpu.matmul %55, %57, %cst_32 {dimension_numbers = #tpu.dot_dimension_numbers<[2], [2], [1], [1], [0, 0, 0, 1, 1, 1], [0], [0]>} : vector<2x8x8xf32>, vector<2x8x8xf32>, vector<2x8x8xf32> -> vector<2x8x8xf32>
    "tpu.trace_stop"() : () -> ()
    %cst_33 = arith.constant 0.353553385 : f32
    %61 = vector.broadcast %cst_33 : f32 to vector<2x8x8xf32>
    %62 = arith.mulf %60, %61 : vector<2x8x8xf32>
    %63 = vector.broadcast %41 : vector<2x1x8xf32> to vector<2x8x8xf32>
    %64 = arith.addf %62, %63 : vector<2x8x8xf32>
    %cst_34 = arith.constant dense<0xFF800000> : vector<2x8xf32>
    %65 = vector.multi_reduction <maximumf>, %64, %cst_34 [2] : vector<2x8x8xf32> to vector<2x8xf32>
    %66 = vector.shape_cast %65 : vector<2x8xf32> to vector<2x8x1xf32>
    %67 = vector.broadcast %66 : vector<2x8x1xf32> to vector<2x8x8xf32>
    %68 = arith.subf %64, %67 : vector<2x8x8xf32>
    %69 = math.exp %68 : vector<2x8x8xf32>
    %cst_35 = arith.constant dense<0.000000e+00> : vector<2x8xf32>
    %70 = vector.multi_reduction <add>, %69, %cst_35 [2] : vector<2x8x8xf32> to vector<2x8xf32>
    %71 = vector.shape_cast %70 : vector<2x8xf32> to vector<2x8x1xf32>
    %72 = tpu.reciprocal %71 {approx = true} : vector<2x8x1xf32> -> vector<2x8x1xf32>
    %73 = vector.broadcast %72 : vector<2x8x1xf32> to vector<2x8x8xf32>
    %74 = arith.mulf %69, %73 : vector<2x8x8xf32>
    "tpu.trace_start"() <{level = 10 : i32, message = "bqk,bkd->bqd"}> : () -> ()
    %cst_36 = arith.constant dense<0.000000e+00> : vector<2x8x8xf32>
    %75 = tpu.matmul %74, %59, %cst_36 {dimension_numbers = #tpu.dot_dimension_numbers<[2], [1], [1], [2], [0, 0, 0, 1, 1, 2], [0], [0]>} : vector<2x8x8xf32>, vector<2x8x8xf32>, vector<2x8x8xf32> -> vector<2x8x8xf32>
    "tpu.trace_stop"() : () -> ()
    %76 = vector.shape_cast %75 : vector<2x8x8xf32> to vector<16x8xf32>
    %77 = arith.truncf %76 : vector<16x8xf32> to vector<16x8xbf16>
    %78 = vector.extract_strided_slice %51 {offsets = [0, 0, 0], sizes = [1, 8, 32], strides = [1, 1, 1]} : vector<4x8x32xbf16> to vector<1x8x32xbf16>
    %79 = vector.shape_cast %78 : vector<1x8x32xbf16> to vector<8x32xbf16>
    %cst_37 = arith.constant dense<0.000000e+00> : vector<16x32xf32>
    %80 = tpu.matmul %77, %79, %cst_37 {dimension_numbers = #tpu.dot_dimension_numbers<[1], [0], [0], [1], [0, 0, 1, 1], [], []>} : vector<16x8xbf16>, vector<8x32xbf16>, vector<16x32xf32> -> vector<16x32xf32>
    %81 = vector.broadcast %53 : vector<1x32xf32> to vector<16x32xf32>
    %82 = arith.addf %81, %80 : vector<16x32xf32>
    %83 = vector.extract_strided_slice %49 {offsets = [0, 8], sizes = [16, 8], strides = [1, 1]} : vector<16x128xf32> to vector<16x8xf32>
    %84 = vector.shape_cast %83 : vector<16x8xf32> to vector<2x8x8xf32>
    %85 = vector.extract_strided_slice %49 {offsets = [0, 40], sizes = [16, 8], strides = [1, 1]} : vector<16x128xf32> to vector<16x8xf32>
    %86 = vector.shape_cast %85 : vector<16x8xf32> to vector<2x8x8xf32>
    %87 = vector.extract_strided_slice %49 {offsets = [0, 72], sizes = [16, 8], strides = [1, 1]} : vector<16x128xf32> to vector<16x8xf32>
    %88 = vector.shape_cast %87 : vector<16x8xf32> to vector<2x8x8xf32>
    "tpu.trace_start"() <{level = 10 : i32, message = "bqd,bkd->bqk"}> : () -> ()
    %cst_38 = arith.constant dense<0.000000e+00> : vector<2x8x8xf32>
    %89 = tpu.matmul %84, %86, %cst_38 {dimension_numbers = #tpu.dot_dimension_numbers<[2], [2], [1], [1], [0, 0, 0, 1, 1, 1], [0], [0]>} : vector<2x8x8xf32>, vector<2x8x8xf32>, vector<2x8x8xf32> -> vector<2x8x8xf32>
    "tpu.trace_stop"() : () -> ()
    %cst_39 = arith.constant 0.353553385 : f32
    %90 = vector.broadcast %cst_39 : f32 to vector<2x8x8xf32>
    %91 = arith.mulf %89, %90 : vector<2x8x8xf32>
    %92 = vector.broadcast %41 : vector<2x1x8xf32> to vector<2x8x8xf32>
    %93 = arith.addf %91, %92 : vector<2x8x8xf32>
    %cst_40 = arith.constant dense<0xFF800000> : vector<2x8xf32>
    %94 = vector.multi_reduction <maximumf>, %93, %cst_40 [2] : vector<2x8x8xf32> to vector<2x8xf32>
    %95 = vector.shape_cast %94 : vector<2x8xf32> to vector<2x8x1xf32>
    %96 = vector.broadcast %95 : vector<2x8x1xf32> to vector<2x8x8xf32>
    %97 = arith.subf %93, %96 : vector<2x8x8xf32>
    %98 = math.exp %97 : vector<2x8x8xf32>
    %cst_41 = arith.constant dense<0.000000e+00> : vector<2x8xf32>
    %99 = vector.multi_reduction <add>, %98, %cst_41 [2] : vector<2x8x8xf32> to vector<2x8xf32>
    %100 = vector.shape_cast %99 : vector<2x8xf32> to vector<2x8x1xf32>
    %101 = tpu.reciprocal %100 {approx = true} : vector<2x8x1xf32> -> vector<2x8x1xf32>
    %102 = vector.broadcast %101 : vector<2x8x1xf32> to vector<2x8x8xf32>
    %103 = arith.mulf %98, %102 : vector<2x8x8xf32>
    "tpu.trace_start"() <{level = 10 : i32, message = "bqk,bkd->bqd"}> : () -> ()
    %cst_42 = arith.constant dense<0.000000e+00> : vector<2x8x8xf32>
    %104 = tpu.matmul %103, %88, %cst_42 {dimension_numbers = #tpu.dot_dimension_numbers<[2], [1], [1], [2], [0, 0, 0, 1, 1, 2], [0], [0]>} : vector<2x8x8xf32>, vector<2x8x8xf32>, vector<2x8x8xf32> -> vector<2x8x8xf32>
    "tpu.trace_stop"() : () -> ()
    %105 = vector.shape_cast %104 : vector<2x8x8xf32> to vector<16x8xf32>
    %106 = arith.truncf %105 : vector<16x8xf32> to vector<16x8xbf16>
    %107 = vector.extract_strided_slice %51 {offsets = [1, 0, 0], sizes = [1, 8, 32], strides = [1, 1, 1]} : vector<4x8x32xbf16> to vector<1x8x32xbf16>
    %108 = vector.shape_cast %107 : vector<1x8x32xbf16> to vector<8x32xbf16>
    %cst_43 = arith.constant dense<0.000000e+00> : vector<16x32xf32>
    %109 = tpu.matmul %106, %108, %cst_43 {dimension_numbers = #tpu.dot_dimension_numbers<[1], [0], [0], [1], [0, 0, 1, 1], [], []>} : vector<16x8xbf16>, vector<8x32xbf16>, vector<16x32xf32> -> vector<16x32xf32>
    %110 = arith.addf %82, %109 : vector<16x32xf32>
    %111 = vector.extract_strided_slice %49 {offsets = [0, 16], sizes = [16, 8], strides = [1, 1]} : vector<16x128xf32> to vector<16x8xf32>
    %112 = vector.shape_cast %111 : vector<16x8xf32> to vector<2x8x8xf32>
    %113 = vector.extract_strided_slice %49 {offsets = [0, 48], sizes = [16, 8], strides = [1, 1]} : vector<16x128xf32> to vector<16x8xf32>
    %114 = vector.shape_cast %113 : vector<16x8xf32> to vector<2x8x8xf32>
    %115 = vector.extract_strided_slice %49 {offsets = [0, 80], sizes = [16, 8], strides = [1, 1]} : vector<16x128xf32> to vector<16x8xf32>
    %116 = vector.shape_cast %115 : vector<16x8xf32> to vector<2x8x8xf32>
    "tpu.trace_start"() <{level = 10 : i32, message = "bqd,bkd->bqk"}> : () -> ()
    %cst_44 = arith.constant dense<0.000000e+00> : vector<2x8x8xf32>
    %117 = tpu.matmul %112, %114, %cst_44 {dimension_numbers = #tpu.dot_dimension_numbers<[2], [2], [1], [1], [0, 0, 0, 1, 1, 1], [0], [0]>} : vector<2x8x8xf32>, vector<2x8x8xf32>, vector<2x8x8xf32> -> vector<2x8x8xf32>
    "tpu.trace_stop"() : () -> ()
    %cst_45 = arith.constant 0.353553385 : f32
    %118 = vector.broadcast %cst_45 : f32 to vector<2x8x8xf32>
    %119 = arith.mulf %117, %118 : vector<2x8x8xf32>
    %120 = vector.broadcast %41 : vector<2x1x8xf32> to vector<2x8x8xf32>
    %121 = arith.addf %119, %120 : vector<2x8x8xf32>
    %cst_46 = arith.constant dense<0xFF800000> : vector<2x8xf32>
    %122 = vector.multi_reduction <maximumf>, %121, %cst_46 [2] : vector<2x8x8xf32> to vector<2x8xf32>
    %123 = vector.shape_cast %122 : vector<2x8xf32> to vector<2x8x1xf32>
    %124 = vector.broadcast %123 : vector<2x8x1xf32> to vector<2x8x8xf32>
    %125 = arith.subf %121, %124 : vector<2x8x8xf32>
    %126 = math.exp %125 : vector<2x8x8xf32>
    %cst_47 = arith.constant dense<0.000000e+00> : vector<2x8xf32>
    %127 = vector.multi_reduction <add>, %126, %cst_47 [2] : vector<2x8x8xf32> to vector<2x8xf32>
    %128 = vector.shape_cast %127 : vector<2x8xf32> to vector<2x8x1xf32>
    %129 = tpu.reciprocal %128 {approx = true} : vector<2x8x1xf32> -> vector<2x8x1xf32>
    %130 = vector.broadcast %129 : vector<2x8x1xf32> to vector<2x8x8xf32>
    %131 = arith.mulf %126, %130 : vector<2x8x8xf32>
    "tpu.trace_start"() <{level = 10 : i32, message = "bqk,bkd->bqd"}> : () -> ()
    %cst_48 = arith.constant dense<0.000000e+00> : vector<2x8x8xf32>
    %132 = tpu.matmul %131, %116, %cst_48 {dimension_numbers = #tpu.dot_dimension_numbers<[2], [1], [1], [2], [0, 0, 0, 1, 1, 2], [0], [0]>} : vector<2x8x8xf32>, vector<2x8x8xf32>, vector<2x8x8xf32> -> vector<2x8x8xf32>
    "tpu.trace_stop"() : () -> ()
    %133 = vector.shape_cast %132 : vector<2x8x8xf32> to vector<16x8xf32>
    %134 = arith.truncf %133 : vector<16x8xf32> to vector<16x8xbf16>
    %135 = vector.extract_strided_slice %51 {offsets = [2, 0, 0], sizes = [1, 8, 32], strides = [1, 1, 1]} : vector<4x8x32xbf16> to vector<1x8x32xbf16>
    %136 = vector.shape_cast %135 : vector<1x8x32xbf16> to vector<8x32xbf16>
    %cst_49 = arith.constant dense<0.000000e+00> : vector<16x32xf32>
    %137 = tpu.matmul %134, %136, %cst_49 {dimension_numbers = #tpu.dot_dimension_numbers<[1], [0], [0], [1], [0, 0, 1, 1], [], []>} : vector<16x8xbf16>, vector<8x32xbf16>, vector<16x32xf32> -> vector<16x32xf32>
    %138 = arith.addf %110, %137 : vector<16x32xf32>
    %139 = vector.extract_strided_slice %49 {offsets = [0, 24], sizes = [16, 8], strides = [1, 1]} : vector<16x128xf32> to vector<16x8xf32>
    %140 = vector.shape_cast %139 : vector<16x8xf32> to vector<2x8x8xf32>
    %141 = vector.extract_strided_slice %49 {offsets = [0, 56], sizes = [16, 8], strides = [1, 1]} : vector<16x128xf32> to vector<16x8xf32>
    %142 = vector.shape_cast %141 : vector<16x8xf32> to vector<2x8x8xf32>
    %143 = vector.extract_strided_slice %49 {offsets = [0, 88], sizes = [16, 8], strides = [1, 1]} : vector<16x128xf32> to vector<16x8xf32>
    %144 = vector.shape_cast %143 : vector<16x8xf32> to vector<2x8x8xf32>
    "tpu.trace_start"() <{level = 10 : i32, message = "bqd,bkd->bqk"}> : () -> ()
    %cst_50 = arith.constant dense<0.000000e+00> : vector<2x8x8xf32>
    %145 = tpu.matmul %140, %142, %cst_50 {dimension_numbers = #tpu.dot_dimension_numbers<[2], [2], [1], [1], [0, 0, 0, 1, 1, 1], [0], [0]>} : vector<2x8x8xf32>, vector<2x8x8xf32>, vector<2x8x8xf32> -> vector<2x8x8xf32>
    "tpu.trace_stop"() : () -> ()
    %cst_51 = arith.constant 0.353553385 : f32
    %146 = vector.broadcast %cst_51 : f32 to vector<2x8x8xf32>
    %147 = arith.mulf %145, %146 : vector<2x8x8xf32>
    %148 = vector.broadcast %41 : vector<2x1x8xf32> to vector<2x8x8xf32>
    %149 = arith.addf %147, %148 : vector<2x8x8xf32>
    %cst_52 = arith.constant dense<0xFF800000> : vector<2x8xf32>
    %150 = vector.multi_reduction <maximumf>, %149, %cst_52 [2] : vector<2x8x8xf32> to vector<2x8xf32>
    %151 = vector.shape_cast %150 : vector<2x8xf32> to vector<2x8x1xf32>
    %152 = vector.broadcast %151 : vector<2x8x1xf32> to vector<2x8x8xf32>
    %153 = arith.subf %149, %152 : vector<2x8x8xf32>
    %154 = math.exp %153 : vector<2x8x8xf32>
    %cst_53 = arith.constant dense<0.000000e+00> : vector<2x8xf32>
    %155 = vector.multi_reduction <add>, %154, %cst_53 [2] : vector<2x8x8xf32> to vector<2x8xf32>
    %156 = vector.shape_cast %155 : vector<2x8xf32> to vector<2x8x1xf32>
    %157 = tpu.reciprocal %156 {approx = true} : vector<2x8x1xf32> -> vector<2x8x1xf32>
    %158 = vector.broadcast %157 : vector<2x8x1xf32> to vector<2x8x8xf32>
    %159 = arith.mulf %154, %158 : vector<2x8x8xf32>
    "tpu.trace_start"() <{level = 10 : i32, message = "bqk,bkd->bqd"}> : () -> ()
    %cst_54 = arith.constant dense<0.000000e+00> : vector<2x8x8xf32>
    %160 = tpu.matmul %159, %144, %cst_54 {dimension_numbers = #tpu.dot_dimension_numbers<[2], [1], [1], [2], [0, 0, 0, 1, 1, 2], [0], [0]>} : vector<2x8x8xf32>, vector<2x8x8xf32>, vector<2x8x8xf32> -> vector<2x8x8xf32>
    "tpu.trace_stop"() : () -> ()
    %161 = vector.shape_cast %160 : vector<2x8x8xf32> to vector<16x8xf32>
    %162 = arith.truncf %161 : vector<16x8xf32> to vector<16x8xbf16>
    %163 = vector.extract_strided_slice %51 {offsets = [3, 0, 0], sizes = [1, 8, 32], strides = [1, 1, 1]} : vector<4x8x32xbf16> to vector<1x8x32xbf16>
    %164 = vector.shape_cast %163 : vector<1x8x32xbf16> to vector<8x32xbf16>
    %cst_55 = arith.constant dense<0.000000e+00> : vector<16x32xf32>
    %165 = tpu.matmul %162, %164, %cst_55 {dimension_numbers = #tpu.dot_dimension_numbers<[1], [0], [0], [1], [0, 0, 1, 1], [], []>} : vector<16x8xbf16>, vector<8x32xbf16>, vector<16x32xf32> -> vector<16x32xf32>
    %166 = arith.addf %138, %165 : vector<16x32xf32>
    %167 = arith.addf %34, %166 : vector<16x32xf32>
    %c0_56 = arith.constant 0 : index
    %c0_57 = arith.constant 0 : index
    %c0_58 = arith.constant 0 : index
    %168 = vector.load %arg10[%c0_56, %c0_57, %c0_58] : memref<2x1x32xf32, #tpu.memory_space<vmem>>, vector<1x1x32xf32>
    %169 = vector.shape_cast %168 : vector<1x1x32xf32> to vector<1x32xf32>
    %c0_59 = arith.constant 0 : index
    %c0_60 = arith.constant 0 : index
    %c0_61 = arith.constant 0 : index
    %170 = vector.load %arg11[%c0_59, %c0_60, %c0_61] : memref<2x1x32xf32, #tpu.memory_space<vmem>>, vector<1x1x32xf32>
    %171 = vector.shape_cast %170 : vector<1x1x32xf32> to vector<1x32xf32>
    %cst_62 = arith.constant dense<0.000000e+00> : vector<16xf32>
    %172 = vector.multi_reduction <add>, %167, %cst_62 [1] : vector<16x32xf32> to vector<16xf32>
    %173 = vector.shape_cast %172 : vector<16xf32> to vector<16x1xf32>
    %cst_63 = arith.constant 3.200000e+01 : f32
    %174 = vector.broadcast %cst_63 : f32 to vector<16x1xf32>
    %175 = arith.divf %173, %174 : vector<16x1xf32>
    %176 = vector.broadcast %175 : vector<16x1xf32> to vector<16x32xf32>
    %177 = arith.subf %167, %176 : vector<16x32xf32>
    %178 = arith.mulf %177, %177 : vector<16x32xf32>
    %cst_64 = arith.constant dense<0.000000e+00> : vector<16xf32>
    %179 = vector.multi_reduction <add>, %178, %cst_64 [1] : vector<16x32xf32> to vector<16xf32>
    %180 = vector.shape_cast %179 : vector<16xf32> to vector<16x1xf32>
    %cst_65 = arith.constant 3.200000e+01 : f32
    %181 = vector.broadcast %cst_65 : f32 to vector<16x1xf32>
    %182 = arith.divf %180, %181 : vector<16x1xf32>
    %cst_66 = arith.constant 9.99999996E-13 : f32
    %183 = vector.broadcast %cst_66 : f32 to vector<16x1xf32>
    %184 = arith.addf %182, %183 : vector<16x1xf32>
    %185 = math.rsqrt %184 : vector<16x1xf32>
    %186 = vector.broadcast %175 : vector<16x1xf32> to vector<16x32xf32>
    %187 = arith.subf %167, %186 : vector<16x32xf32>
    %188 = vector.broadcast %185 : vector<16x1xf32> to vector<16x32xf32>
    %189 = arith.mulf %187, %188 : vector<16x32xf32>
    %190 = vector.broadcast %169 : vector<1x32xf32> to vector<16x32xf32>
    %191 = arith.mulf %189, %190 : vector<16x32xf32>
    %192 = vector.broadcast %171 : vector<1x32xf32> to vector<16x32xf32>
    %193 = arith.addf %191, %192 : vector<16x32xf32>
    %194 = arith.truncf %193 : vector<16x32xf32> to vector<16x32xbf16>
    %c0_67 = arith.constant 0 : index
    %c0_68 = arith.constant 0 : index
    %c0_69 = arith.constant 0 : index
    %195 = vector.load %arg12[%c0_67, %c0_68, %c0_69] : memref<2x32x64xbf16, #tpu.memory_space<vmem>>, vector<1x32x64xbf16>
    %196 = vector.shape_cast %195 : vector<1x32x64xbf16> to vector<32x64xbf16>
    %cst_70 = arith.constant dense<0.000000e+00> : vector<16x64xf32>
    %197 = tpu.matmul %194, %196, %cst_70 {dimension_numbers = #tpu.dot_dimension_numbers<[1], [0], [0], [1], [0, 0, 1, 1], [], []>} : vector<16x32xbf16>, vector<32x64xbf16>, vector<16x64xf32> -> vector<16x64xf32>
    %c0_71 = arith.constant 0 : index
    %c0_72 = arith.constant 0 : index
    %c0_73 = arith.constant 0 : index
    %198 = vector.load %arg13[%c0_71, %c0_72, %c0_73] : memref<2x1x64xf32, #tpu.memory_space<vmem>>, vector<1x1x64xf32>
    %199 = vector.shape_cast %198 : vector<1x1x64xf32> to vector<1x64xf32>
    %200 = vector.broadcast %199 : vector<1x64xf32> to vector<16x64xf32>
    %201 = arith.addf %197, %200 : vector<16x64xf32>
    %202 = arith.mulf %201, %201 : vector<16x64xf32>
    %203 = arith.mulf %201, %202 : vector<16x64xf32>
    %cst_74 = arith.constant 4.471500e-02 : f32
    %204 = vector.broadcast %cst_74 : f32 to vector<16x64xf32>
    %205 = arith.mulf %204, %203 : vector<16x64xf32>
    %206 = arith.addf %201, %205 : vector<16x64xf32>
    %cst_75 = arith.constant 0.797884583 : f32
    %207 = vector.broadcast %cst_75 : f32 to vector<16x64xf32>
    %208 = arith.mulf %207, %206 : vector<16x64xf32>
    %209 = math.tanh %208 : vector<16x64xf32>
    %cst_76 = arith.constant 1.000000e+00 : f32
    %210 = vector.broadcast %cst_76 : f32 to vector<16x64xf32>
    %211 = arith.addf %210, %209 : vector<16x64xf32>
    %cst_77 = arith.constant 5.000000e-01 : f32
    %212 = vector.broadcast %cst_77 : f32 to vector<16x64xf32>
    %213 = arith.mulf %212, %211 : vector<16x64xf32>
    %214 = arith.mulf %201, %213 : vector<16x64xf32>
    %215 = arith.truncf %214 : vector<16x64xf32> to vector<16x64xbf16>
    %c0_78 = arith.constant 0 : index
    %c0_79 = arith.constant 0 : index
    %c0_80 = arith.constant 0 : index
    %216 = vector.load %arg14[%c0_78, %c0_79, %c0_80] : memref<2x64x32xbf16, #tpu.memory_space<vmem>>, vector<1x64x32xbf16>
    %217 = vector.shape_cast %216 : vector<1x64x32xbf16> to vector<64x32xbf16>
    %cst_81 = arith.constant dense<0.000000e+00> : vector<16x32xf32>
    %218 = tpu.matmul %215, %217, %cst_81 {dimension_numbers = #tpu.dot_dimension_numbers<[1], [0], [0], [1], [0, 0, 1, 1], [], []>} : vector<16x64xbf16>, vector<64x32xbf16>, vector<16x32xf32> -> vector<16x32xf32>
    %c0_82 = arith.constant 0 : index
    %c0_83 = arith.constant 0 : index
    %c0_84 = arith.constant 0 : index
    %219 = vector.load %arg15[%c0_82, %c0_83, %c0_84] : memref<2x1x32xf32, #tpu.memory_space<vmem>>, vector<1x1x32xf32>
    %220 = vector.shape_cast %219 : vector<1x1x32xf32> to vector<1x32xf32>
    %221 = vector.broadcast %220 : vector<1x32xf32> to vector<16x32xf32>
    %222 = arith.addf %218, %221 : vector<16x32xf32>
    %223 = arith.addf %193, %222 : vector<16x32xf32>
    %c0_85 = arith.constant 0 : index
    %c0_86 = arith.constant 0 : index
    %c0_87 = arith.constant 0 : index
    %224 = vector.load %arg16[%c0_85, %c0_86, %c0_87] : memref<2x1x32xf32, #tpu.memory_space<vmem>>, vector<1x1x32xf32>
    %225 = vector.shape_cast %224 : vector<1x1x32xf32> to vector<1x32xf32>
    %c0_88 = arith.constant 0 : index
    %c0_89 = arith.constant 0 : index
    %c0_90 = arith.constant 0 : index
    %226 = vector.load %arg17[%c0_88, %c0_89, %c0_90] : memref<2x1x32xf32, #tpu.memory_space<vmem>>, vector<1x1x32xf32>
    %227 = vector.shape_cast %226 : vector<1x1x32xf32> to vector<1x32xf32>
    %cst_91 = arith.constant dense<0.000000e+00> : vector<16xf32>
    %228 = vector.multi_reduction <add>, %223, %cst_91 [1] : vector<16x32xf32> to vector<16xf32>
    %229 = vector.shape_cast %228 : vector<16xf32> to vector<16x1xf32>
    %cst_92 = arith.constant 3.200000e+01 : f32
    %230 = vector.broadcast %cst_92 : f32 to vector<16x1xf32>
    %231 = arith.divf %229, %230 : vector<16x1xf32>
    %232 = vector.broadcast %231 : vector<16x1xf32> to vector<16x32xf32>
    %233 = arith.subf %223, %232 : vector<16x32xf32>
    %234 = arith.mulf %233, %233 : vector<16x32xf32>
    %cst_93 = arith.constant dense<0.000000e+00> : vector<16xf32>
    %235 = vector.multi_reduction <add>, %234, %cst_93 [1] : vector<16x32xf32> to vector<16xf32>
    %236 = vector.shape_cast %235 : vector<16xf32> to vector<16x1xf32>
    %cst_94 = arith.constant 3.200000e+01 : f32
    %237 = vector.broadcast %cst_94 : f32 to vector<16x1xf32>
    %238 = arith.divf %236, %237 : vector<16x1xf32>
    %cst_95 = arith.constant 9.99999996E-13 : f32
    %239 = vector.broadcast %cst_95 : f32 to vector<16x1xf32>
    %240 = arith.addf %238, %239 : vector<16x1xf32>
    %241 = math.rsqrt %240 : vector<16x1xf32>
    %242 = vector.broadcast %231 : vector<16x1xf32> to vector<16x32xf32>
    %243 = arith.subf %223, %242 : vector<16x32xf32>
    %244 = vector.broadcast %241 : vector<16x1xf32> to vector<16x32xf32>
    %245 = arith.mulf %243, %244 : vector<16x32xf32>
    %246 = vector.broadcast %225 : vector<1x32xf32> to vector<16x32xf32>
    %247 = arith.mulf %245, %246 : vector<16x32xf32>
    %248 = vector.broadcast %227 : vector<1x32xf32> to vector<16x32xf32>
    %249 = arith.addf %247, %248 : vector<16x32xf32>
    %250 = arith.truncf %249 : vector<16x32xf32> to vector<16x32xbf16>
    %c1 = arith.constant 1 : index
    %c0_96 = arith.constant 0 : index
    %c0_97 = arith.constant 0 : index
    %251 = vector.load %arg6[%c1, %c0_96, %c0_97] : memref<2x32x128xbf16, #tpu.memory_space<vmem>>, vector<1x32x128xbf16>
    %252 = vector.shape_cast %251 : vector<1x32x128xbf16> to vector<32x128xbf16>
    %cst_98 = arith.constant dense<0.000000e+00> : vector<16x128xf32>
    %253 = tpu.matmul %250, %252, %cst_98 {dimension_numbers = #tpu.dot_dimension_numbers<[1], [0], [0], [1], [0, 0, 1, 1], [], []>} : vector<16x32xbf16>, vector<32x128xbf16>, vector<16x128xf32> -> vector<16x128xf32>
    %c1_99 = arith.constant 1 : index
    %c0_100 = arith.constant 0 : index
    %c0_101 = arith.constant 0 : index
    %254 = vector.load %arg7[%c1_99, %c0_100, %c0_101] : memref<2x1x128xf32, #tpu.memory_space<vmem>>, vector<1x1x128xf32>
    %255 = vector.shape_cast %254 : vector<1x1x128xf32> to vector<1x128xf32>
    %256 = vector.broadcast %255 : vector<1x128xf32> to vector<16x128xf32>
    %257 = arith.addf %253, %256 : vector<16x128xf32>
    %c1_102 = arith.constant 1 : index
    %c0_103 = arith.constant 0 : index
    %c0_104 = arith.constant 0 : index
    %c0_105 = arith.constant 0 : index
    %258 = vector.load %arg8[%c1_102, %c0_103, %c0_104, %c0_105] : memref<2x4x8x32xbf16, #tpu.memory_space<vmem>>, vector<1x4x8x32xbf16>
    %259 = vector.shape_cast %258 : vector<1x4x8x32xbf16> to vector<4x8x32xbf16>
    %c1_106 = arith.constant 1 : index
    %c0_107 = arith.constant 0 : index
    %c0_108 = arith.constant 0 : index
    %260 = vector.load %arg9[%c1_106, %c0_107, %c0_108] : memref<2x1x32xf32, #tpu.memory_space<vmem>>, vector<1x1x32xf32>
    %261 = vector.shape_cast %260 : vector<1x1x32xf32> to vector<1x32xf32>
    %262 = vector.extract_strided_slice %257 {offsets = [0, 0], sizes = [16, 8], strides = [1, 1]} : vector<16x128xf32> to vector<16x8xf32>
    %263 = vector.shape_cast %262 : vector<16x8xf32> to vector<2x8x8xf32>
    %264 = vector.extract_strided_slice %257 {offsets = [0, 32], sizes = [16, 8], strides = [1, 1]} : vector<16x128xf32> to vector<16x8xf32>
    %265 = vector.shape_cast %264 : vector<16x8xf32> to vector<2x8x8xf32>
    %266 = vector.extract_strided_slice %257 {offsets = [0, 64], sizes = [16, 8], strides = [1, 1]} : vector<16x128xf32> to vector<16x8xf32>
    %267 = vector.shape_cast %266 : vector<16x8xf32> to vector<2x8x8xf32>
    "tpu.trace_start"() <{level = 10 : i32, message = "bqd,bkd->bqk"}> : () -> ()
    %cst_109 = arith.constant dense<0.000000e+00> : vector<2x8x8xf32>
    %268 = tpu.matmul %263, %265, %cst_109 {dimension_numbers = #tpu.dot_dimension_numbers<[2], [2], [1], [1], [0, 0, 0, 1, 1, 1], [0], [0]>} : vector<2x8x8xf32>, vector<2x8x8xf32>, vector<2x8x8xf32> -> vector<2x8x8xf32>
    "tpu.trace_stop"() : () -> ()
    %cst_110 = arith.constant 0.353553385 : f32
    %269 = vector.broadcast %cst_110 : f32 to vector<2x8x8xf32>
    %270 = arith.mulf %268, %269 : vector<2x8x8xf32>
    %271 = vector.broadcast %41 : vector<2x1x8xf32> to vector<2x8x8xf32>
    %272 = arith.addf %270, %271 : vector<2x8x8xf32>
    %cst_111 = arith.constant dense<0xFF800000> : vector<2x8xf32>
    %273 = vector.multi_reduction <maximumf>, %272, %cst_111 [2] : vector<2x8x8xf32> to vector<2x8xf32>
    %274 = vector.shape_cast %273 : vector<2x8xf32> to vector<2x8x1xf32>
    %275 = vector.broadcast %274 : vector<2x8x1xf32> to vector<2x8x8xf32>
    %276 = arith.subf %272, %275 : vector<2x8x8xf32>
    %277 = math.exp %276 : vector<2x8x8xf32>
    %cst_112 = arith.constant dense<0.000000e+00> : vector<2x8xf32>
    %278 = vector.multi_reduction <add>, %277, %cst_112 [2] : vector<2x8x8xf32> to vector<2x8xf32>
    %279 = vector.shape_cast %278 : vector<2x8xf32> to vector<2x8x1xf32>
    %280 = tpu.reciprocal %279 {approx = true} : vector<2x8x1xf32> -> vector<2x8x1xf32>
    %281 = vector.broadcast %280 : vector<2x8x1xf32> to vector<2x8x8xf32>
    %282 = arith.mulf %277, %281 : vector<2x8x8xf32>
    "tpu.trace_start"() <{level = 10 : i32, message = "bqk,bkd->bqd"}> : () -> ()
    %cst_113 = arith.constant dense<0.000000e+00> : vector<2x8x8xf32>
    %283 = tpu.matmul %282, %267, %cst_113 {dimension_numbers = #tpu.dot_dimension_numbers<[2], [1], [1], [2], [0, 0, 0, 1, 1, 2], [0], [0]>} : vector<2x8x8xf32>, vector<2x8x8xf32>, vector<2x8x8xf32> -> vector<2x8x8xf32>
    "tpu.trace_stop"() : () -> ()
    %284 = vector.shape_cast %283 : vector<2x8x8xf32> to vector<16x8xf32>
    %285 = arith.truncf %284 : vector<16x8xf32> to vector<16x8xbf16>
    %286 = vector.extract_strided_slice %259 {offsets = [0, 0, 0], sizes = [1, 8, 32], strides = [1, 1, 1]} : vector<4x8x32xbf16> to vector<1x8x32xbf16>
    %287 = vector.shape_cast %286 : vector<1x8x32xbf16> to vector<8x32xbf16>
    %cst_114 = arith.constant dense<0.000000e+00> : vector<16x32xf32>
    %288 = tpu.matmul %285, %287, %cst_114 {dimension_numbers = #tpu.dot_dimension_numbers<[1], [0], [0], [1], [0, 0, 1, 1], [], []>} : vector<16x8xbf16>, vector<8x32xbf16>, vector<16x32xf32> -> vector<16x32xf32>
    %289 = vector.broadcast %261 : vector<1x32xf32> to vector<16x32xf32>
    %290 = arith.addf %289, %288 : vector<16x32xf32>
    %291 = vector.extract_strided_slice %257 {offsets = [0, 8], sizes = [16, 8], strides = [1, 1]} : vector<16x128xf32> to vector<16x8xf32>
    %292 = vector.shape_cast %291 : vector<16x8xf32> to vector<2x8x8xf32>
    %293 = vector.extract_strided_slice %257 {offsets = [0, 40], sizes = [16, 8], strides = [1, 1]} : vector<16x128xf32> to vector<16x8xf32>
    %294 = vector.shape_cast %293 : vector<16x8xf32> to vector<2x8x8xf32>
    %295 = vector.extract_strided_slice %257 {offsets = [0, 72], sizes = [16, 8], strides = [1, 1]} : vector<16x128xf32> to vector<16x8xf32>
    %296 = vector.shape_cast %295 : vector<16x8xf32> to vector<2x8x8xf32>
    "tpu.trace_start"() <{level = 10 : i32, message = "bqd,bkd->bqk"}> : () -> ()
    %cst_115 = arith.constant dense<0.000000e+00> : vector<2x8x8xf32>
    %297 = tpu.matmul %292, %294, %cst_115 {dimension_numbers = #tpu.dot_dimension_numbers<[2], [2], [1], [1], [0, 0, 0, 1, 1, 1], [0], [0]>} : vector<2x8x8xf32>, vector<2x8x8xf32>, vector<2x8x8xf32> -> vector<2x8x8xf32>
    "tpu.trace_stop"() : () -> ()
    %cst_116 = arith.constant 0.353553385 : f32
    %298 = vector.broadcast %cst_116 : f32 to vector<2x8x8xf32>
    %299 = arith.mulf %297, %298 : vector<2x8x8xf32>
    %300 = vector.broadcast %41 : vector<2x1x8xf32> to vector<2x8x8xf32>
    %301 = arith.addf %299, %300 : vector<2x8x8xf32>
    %cst_117 = arith.constant dense<0xFF800000> : vector<2x8xf32>
    %302 = vector.multi_reduction <maximumf>, %301, %cst_117 [2] : vector<2x8x8xf32> to vector<2x8xf32>
    %303 = vector.shape_cast %302 : vector<2x8xf32> to vector<2x8x1xf32>
    %304 = vector.broadcast %303 : vector<2x8x1xf32> to vector<2x8x8xf32>
    %305 = arith.subf %301, %304 : vector<2x8x8xf32>
    %306 = math.exp %305 : vector<2x8x8xf32>
    %cst_118 = arith.constant dense<0.000000e+00> : vector<2x8xf32>
    %307 = vector.multi_reduction <add>, %306, %cst_118 [2] : vector<2x8x8xf32> to vector<2x8xf32>
    %308 = vector.shape_cast %307 : vector<2x8xf32> to vector<2x8x1xf32>
    %309 = tpu.reciprocal %308 {approx = true} : vector<2x8x1xf32> -> vector<2x8x1xf32>
    %310 = vector.broadcast %309 : vector<2x8x1xf32> to vector<2x8x8xf32>
    %311 = arith.mulf %306, %310 : vector<2x8x8xf32>
    "tpu.trace_start"() <{level = 10 : i32, message = "bqk,bkd->bqd"}> : () -> ()
    %cst_119 = arith.constant dense<0.000000e+00> : vector<2x8x8xf32>
    %312 = tpu.matmul %311, %296, %cst_119 {dimension_numbers = #tpu.dot_dimension_numbers<[2], [1], [1], [2], [0, 0, 0, 1, 1, 2], [0], [0]>} : vector<2x8x8xf32>, vector<2x8x8xf32>, vector<2x8x8xf32> -> vector<2x8x8xf32>
    "tpu.trace_stop"() : () -> ()
    %313 = vector.shape_cast %312 : vector<2x8x8xf32> to vector<16x8xf32>
    %314 = arith.truncf %313 : vector<16x8xf32> to vector<16x8xbf16>
    %315 = vector.extract_strided_slice %259 {offsets = [1, 0, 0], sizes = [1, 8, 32], strides = [1, 1, 1]} : vector<4x8x32xbf16> to vector<1x8x32xbf16>
    %316 = vector.shape_cast %315 : vector<1x8x32xbf16> to vector<8x32xbf16>
    %cst_120 = arith.constant dense<0.000000e+00> : vector<16x32xf32>
    %317 = tpu.matmul %314, %316, %cst_120 {dimension_numbers = #tpu.dot_dimension_numbers<[1], [0], [0], [1], [0, 0, 1, 1], [], []>} : vector<16x8xbf16>, vector<8x32xbf16>, vector<16x32xf32> -> vector<16x32xf32>
    %318 = arith.addf %290, %317 : vector<16x32xf32>
    %319 = vector.extract_strided_slice %257 {offsets = [0, 16], sizes = [16, 8], strides = [1, 1]} : vector<16x128xf32> to vector<16x8xf32>
    %320 = vector.shape_cast %319 : vector<16x8xf32> to vector<2x8x8xf32>
    %321 = vector.extract_strided_slice %257 {offsets = [0, 48], sizes = [16, 8], strides = [1, 1]} : vector<16x128xf32> to vector<16x8xf32>
    %322 = vector.shape_cast %321 : vector<16x8xf32> to vector<2x8x8xf32>
    %323 = vector.extract_strided_slice %257 {offsets = [0, 80], sizes = [16, 8], strides = [1, 1]} : vector<16x128xf32> to vector<16x8xf32>
    %324 = vector.shape_cast %323 : vector<16x8xf32> to vector<2x8x8xf32>
    "tpu.trace_start"() <{level = 10 : i32, message = "bqd,bkd->bqk"}> : () -> ()
    %cst_121 = arith.constant dense<0.000000e+00> : vector<2x8x8xf32>
    %325 = tpu.matmul %320, %322, %cst_121 {dimension_numbers = #tpu.dot_dimension_numbers<[2], [2], [1], [1], [0, 0, 0, 1, 1, 1], [0], [0]>} : vector<2x8x8xf32>, vector<2x8x8xf32>, vector<2x8x8xf32> -> vector<2x8x8xf32>
    "tpu.trace_stop"() : () -> ()
    %cst_122 = arith.constant 0.353553385 : f32
    %326 = vector.broadcast %cst_122 : f32 to vector<2x8x8xf32>
    %327 = arith.mulf %325, %326 : vector<2x8x8xf32>
    %328 = vector.broadcast %41 : vector<2x1x8xf32> to vector<2x8x8xf32>
    %329 = arith.addf %327, %328 : vector<2x8x8xf32>
    %cst_123 = arith.constant dense<0xFF800000> : vector<2x8xf32>
    %330 = vector.multi_reduction <maximumf>, %329, %cst_123 [2] : vector<2x8x8xf32> to vector<2x8xf32>
    %331 = vector.shape_cast %330 : vector<2x8xf32> to vector<2x8x1xf32>
    %332 = vector.broadcast %331 : vector<2x8x1xf32> to vector<2x8x8xf32>
    %333 = arith.subf %329, %332 : vector<2x8x8xf32>
    %334 = math.exp %333 : vector<2x8x8xf32>
    %cst_124 = arith.constant dense<0.000000e+00> : vector<2x8xf32>
    %335 = vector.multi_reduction <add>, %334, %cst_124 [2] : vector<2x8x8xf32> to vector<2x8xf32>
    %336 = vector.shape_cast %335 : vector<2x8xf32> to vector<2x8x1xf32>
    %337 = tpu.reciprocal %336 {approx = true} : vector<2x8x1xf32> -> vector<2x8x1xf32>
    %338 = vector.broadcast %337 : vector<2x8x1xf32> to vector<2x8x8xf32>
    %339 = arith.mulf %334, %338 : vector<2x8x8xf32>
    "tpu.trace_start"() <{level = 10 : i32, message = "bqk,bkd->bqd"}> : () -> ()
    %cst_125 = arith.constant dense<0.000000e+00> : vector<2x8x8xf32>
    %340 = tpu.matmul %339, %324, %cst_125 {dimension_numbers = #tpu.dot_dimension_numbers<[2], [1], [1], [2], [0, 0, 0, 1, 1, 2], [0], [0]>} : vector<2x8x8xf32>, vector<2x8x8xf32>, vector<2x8x8xf32> -> vector<2x8x8xf32>
    "tpu.trace_stop"() : () -> ()
    %341 = vector.shape_cast %340 : vector<2x8x8xf32> to vector<16x8xf32>
    %342 = arith.truncf %341 : vector<16x8xf32> to vector<16x8xbf16>
    %343 = vector.extract_strided_slice %259 {offsets = [2, 0, 0], sizes = [1, 8, 32], strides = [1, 1, 1]} : vector<4x8x32xbf16> to vector<1x8x32xbf16>
    %344 = vector.shape_cast %343 : vector<1x8x32xbf16> to vector<8x32xbf16>
    %cst_126 = arith.constant dense<0.000000e+00> : vector<16x32xf32>
    %345 = tpu.matmul %342, %344, %cst_126 {dimension_numbers = #tpu.dot_dimension_numbers<[1], [0], [0], [1], [0, 0, 1, 1], [], []>} : vector<16x8xbf16>, vector<8x32xbf16>, vector<16x32xf32> -> vector<16x32xf32>
    %346 = arith.addf %318, %345 : vector<16x32xf32>
    %347 = vector.extract_strided_slice %257 {offsets = [0, 24], sizes = [16, 8], strides = [1, 1]} : vector<16x128xf32> to vector<16x8xf32>
    %348 = vector.shape_cast %347 : vector<16x8xf32> to vector<2x8x8xf32>
    %349 = vector.extract_strided_slice %257 {offsets = [0, 56], sizes = [16, 8], strides = [1, 1]} : vector<16x128xf32> to vector<16x8xf32>
    %350 = vector.shape_cast %349 : vector<16x8xf32> to vector<2x8x8xf32>
    %351 = vector.extract_strided_slice %257 {offsets = [0, 88], sizes = [16, 8], strides = [1, 1]} : vector<16x128xf32> to vector<16x8xf32>
    %352 = vector.shape_cast %351 : vector<16x8xf32> to vector<2x8x8xf32>
    "tpu.trace_start"() <{level = 10 : i32, message = "bqd,bkd->bqk"}> : () -> ()
    %cst_127 = arith.constant dense<0.000000e+00> : vector<2x8x8xf32>
    %353 = tpu.matmul %348, %350, %cst_127 {dimension_numbers = #tpu.dot_dimension_numbers<[2], [2], [1], [1], [0, 0, 0, 1, 1, 1], [0], [0]>} : vector<2x8x8xf32>, vector<2x8x8xf32>, vector<2x8x8xf32> -> vector<2x8x8xf32>
    "tpu.trace_stop"() : () -> ()
    %cst_128 = arith.constant 0.353553385 : f32
    %354 = vector.broadcast %cst_128 : f32 to vector<2x8x8xf32>
    %355 = arith.mulf %353, %354 : vector<2x8x8xf32>
    %356 = vector.broadcast %41 : vector<2x1x8xf32> to vector<2x8x8xf32>
    %357 = arith.addf %355, %356 : vector<2x8x8xf32>
    %cst_129 = arith.constant dense<0xFF800000> : vector<2x8xf32>
    %358 = vector.multi_reduction <maximumf>, %357, %cst_129 [2] : vector<2x8x8xf32> to vector<2x8xf32>
    %359 = vector.shape_cast %358 : vector<2x8xf32> to vector<2x8x1xf32>
    %360 = vector.broadcast %359 : vector<2x8x1xf32> to vector<2x8x8xf32>
    %361 = arith.subf %357, %360 : vector<2x8x8xf32>
    %362 = math.exp %361 : vector<2x8x8xf32>
    %cst_130 = arith.constant dense<0.000000e+00> : vector<2x8xf32>
    %363 = vector.multi_reduction <add>, %362, %cst_130 [2] : vector<2x8x8xf32> to vector<2x8xf32>
    %364 = vector.shape_cast %363 : vector<2x8xf32> to vector<2x8x1xf32>
    %365 = tpu.reciprocal %364 {approx = true} : vector<2x8x1xf32> -> vector<2x8x1xf32>
    %366 = vector.broadcast %365 : vector<2x8x1xf32> to vector<2x8x8xf32>
    %367 = arith.mulf %362, %366 : vector<2x8x8xf32>
    "tpu.trace_start"() <{level = 10 : i32, message = "bqk,bkd->bqd"}> : () -> ()
    %cst_131 = arith.constant dense<0.000000e+00> : vector<2x8x8xf32>
    %368 = tpu.matmul %367, %352, %cst_131 {dimension_numbers = #tpu.dot_dimension_numbers<[2], [1], [1], [2], [0, 0, 0, 1, 1, 2], [0], [0]>} : vector<2x8x8xf32>, vector<2x8x8xf32>, vector<2x8x8xf32> -> vector<2x8x8xf32>
    "tpu.trace_stop"() : () -> ()
    %369 = vector.shape_cast %368 : vector<2x8x8xf32> to vector<16x8xf32>
    %370 = arith.truncf %369 : vector<16x8xf32> to vector<16x8xbf16>
    %371 = vector.extract_strided_slice %259 {offsets = [3, 0, 0], sizes = [1, 8, 32], strides = [1, 1, 1]} : vector<4x8x32xbf16> to vector<1x8x32xbf16>
    %372 = vector.shape_cast %371 : vector<1x8x32xbf16> to vector<8x32xbf16>
    %cst_132 = arith.constant dense<0.000000e+00> : vector<16x32xf32>
    %373 = tpu.matmul %370, %372, %cst_132 {dimension_numbers = #tpu.dot_dimension_numbers<[1], [0], [0], [1], [0, 0, 1, 1], [], []>} : vector<16x8xbf16>, vector<8x32xbf16>, vector<16x32xf32> -> vector<16x32xf32>
    %374 = arith.addf %346, %373 : vector<16x32xf32>
    %375 = arith.addf %249, %374 : vector<16x32xf32>
    %c1_133 = arith.constant 1 : index
    %c0_134 = arith.constant 0 : index
    %c0_135 = arith.constant 0 : index
    %376 = vector.load %arg10[%c1_133, %c0_134, %c0_135] : memref<2x1x32xf32, #tpu.memory_space<vmem>>, vector<1x1x32xf32>
    %377 = vector.shape_cast %376 : vector<1x1x32xf32> to vector<1x32xf32>
    %c1_136 = arith.constant 1 : index
    %c0_137 = arith.constant 0 : index
    %c0_138 = arith.constant 0 : index
    %378 = vector.load %arg11[%c1_136, %c0_137, %c0_138] : memref<2x1x32xf32, #tpu.memory_space<vmem>>, vector<1x1x32xf32>
    %379 = vector.shape_cast %378 : vector<1x1x32xf32> to vector<1x32xf32>
    %cst_139 = arith.constant dense<0.000000e+00> : vector<16xf32>
    %380 = vector.multi_reduction <add>, %375, %cst_139 [1] : vector<16x32xf32> to vector<16xf32>
    %381 = vector.shape_cast %380 : vector<16xf32> to vector<16x1xf32>
    %cst_140 = arith.constant 3.200000e+01 : f32
    %382 = vector.broadcast %cst_140 : f32 to vector<16x1xf32>
    %383 = arith.divf %381, %382 : vector<16x1xf32>
    %384 = vector.broadcast %383 : vector<16x1xf32> to vector<16x32xf32>
    %385 = arith.subf %375, %384 : vector<16x32xf32>
    %386 = arith.mulf %385, %385 : vector<16x32xf32>
    %cst_141 = arith.constant dense<0.000000e+00> : vector<16xf32>
    %387 = vector.multi_reduction <add>, %386, %cst_141 [1] : vector<16x32xf32> to vector<16xf32>
    %388 = vector.shape_cast %387 : vector<16xf32> to vector<16x1xf32>
    %cst_142 = arith.constant 3.200000e+01 : f32
    %389 = vector.broadcast %cst_142 : f32 to vector<16x1xf32>
    %390 = arith.divf %388, %389 : vector<16x1xf32>
    %cst_143 = arith.constant 9.99999996E-13 : f32
    %391 = vector.broadcast %cst_143 : f32 to vector<16x1xf32>
    %392 = arith.addf %390, %391 : vector<16x1xf32>
    %393 = math.rsqrt %392 : vector<16x1xf32>
    %394 = vector.broadcast %383 : vector<16x1xf32> to vector<16x32xf32>
    %395 = arith.subf %375, %394 : vector<16x32xf32>
    %396 = vector.broadcast %393 : vector<16x1xf32> to vector<16x32xf32>
    %397 = arith.mulf %395, %396 : vector<16x32xf32>
    %398 = vector.broadcast %377 : vector<1x32xf32> to vector<16x32xf32>
    %399 = arith.mulf %397, %398 : vector<16x32xf32>
    %400 = vector.broadcast %379 : vector<1x32xf32> to vector<16x32xf32>
    %401 = arith.addf %399, %400 : vector<16x32xf32>
    %402 = arith.truncf %401 : vector<16x32xf32> to vector<16x32xbf16>
    %c1_144 = arith.constant 1 : index
    %c0_145 = arith.constant 0 : index
    %c0_146 = arith.constant 0 : index
    %403 = vector.load %arg12[%c1_144, %c0_145, %c0_146] : memref<2x32x64xbf16, #tpu.memory_space<vmem>>, vector<1x32x64xbf16>
    %404 = vector.shape_cast %403 : vector<1x32x64xbf16> to vector<32x64xbf16>
    %cst_147 = arith.constant dense<0.000000e+00> : vector<16x64xf32>
    %405 = tpu.matmul %402, %404, %cst_147 {dimension_numbers = #tpu.dot_dimension_numbers<[1], [0], [0], [1], [0, 0, 1, 1], [], []>} : vector<16x32xbf16>, vector<32x64xbf16>, vector<16x64xf32> -> vector<16x64xf32>
    %c1_148 = arith.constant 1 : index
    %c0_149 = arith.constant 0 : index
    %c0_150 = arith.constant 0 : index
    %406 = vector.load %arg13[%c1_148, %c0_149, %c0_150] : memref<2x1x64xf32, #tpu.memory_space<vmem>>, vector<1x1x64xf32>
    %407 = vector.shape_cast %406 : vector<1x1x64xf32> to vector<1x64xf32>
    %408 = vector.broadcast %407 : vector<1x64xf32> to vector<16x64xf32>
    %409 = arith.addf %405, %408 : vector<16x64xf32>
    %410 = arith.mulf %409, %409 : vector<16x64xf32>
    %411 = arith.mulf %409, %410 : vector<16x64xf32>
    %cst_151 = arith.constant 4.471500e-02 : f32
    %412 = vector.broadcast %cst_151 : f32 to vector<16x64xf32>
    %413 = arith.mulf %412, %411 : vector<16x64xf32>
    %414 = arith.addf %409, %413 : vector<16x64xf32>
    %cst_152 = arith.constant 0.797884583 : f32
    %415 = vector.broadcast %cst_152 : f32 to vector<16x64xf32>
    %416 = arith.mulf %415, %414 : vector<16x64xf32>
    %417 = math.tanh %416 : vector<16x64xf32>
    %cst_153 = arith.constant 1.000000e+00 : f32
    %418 = vector.broadcast %cst_153 : f32 to vector<16x64xf32>
    %419 = arith.addf %418, %417 : vector<16x64xf32>
    %cst_154 = arith.constant 5.000000e-01 : f32
    %420 = vector.broadcast %cst_154 : f32 to vector<16x64xf32>
    %421 = arith.mulf %420, %419 : vector<16x64xf32>
    %422 = arith.mulf %409, %421 : vector<16x64xf32>
    %423 = arith.truncf %422 : vector<16x64xf32> to vector<16x64xbf16>
    %c1_155 = arith.constant 1 : index
    %c0_156 = arith.constant 0 : index
    %c0_157 = arith.constant 0 : index
    %424 = vector.load %arg14[%c1_155, %c0_156, %c0_157] : memref<2x64x32xbf16, #tpu.memory_space<vmem>>, vector<1x64x32xbf16>
    %425 = vector.shape_cast %424 : vector<1x64x32xbf16> to vector<64x32xbf16>
    %cst_158 = arith.constant dense<0.000000e+00> : vector<16x32xf32>
    %426 = tpu.matmul %423, %425, %cst_158 {dimension_numbers = #tpu.dot_dimension_numbers<[1], [0], [0], [1], [0, 0, 1, 1], [], []>} : vector<16x64xbf16>, vector<64x32xbf16>, vector<16x32xf32> -> vector<16x32xf32>
    %c1_159 = arith.constant 1 : index
    %c0_160 = arith.constant 0 : index
    %c0_161 = arith.constant 0 : index
    %427 = vector.load %arg15[%c1_159, %c0_160, %c0_161] : memref<2x1x32xf32, #tpu.memory_space<vmem>>, vector<1x1x32xf32>
    %428 = vector.shape_cast %427 : vector<1x1x32xf32> to vector<1x32xf32>
    %429 = vector.broadcast %428 : vector<1x32xf32> to vector<16x32xf32>
    %430 = arith.addf %426, %429 : vector<16x32xf32>
    %431 = arith.addf %401, %430 : vector<16x32xf32>
    %c1_162 = arith.constant 1 : index
    %c0_163 = arith.constant 0 : index
    %c0_164 = arith.constant 0 : index
    %432 = vector.load %arg16[%c1_162, %c0_163, %c0_164] : memref<2x1x32xf32, #tpu.memory_space<vmem>>, vector<1x1x32xf32>
    %433 = vector.shape_cast %432 : vector<1x1x32xf32> to vector<1x32xf32>
    %c1_165 = arith.constant 1 : index
    %c0_166 = arith.constant 0 : index
    %c0_167 = arith.constant 0 : index
    %434 = vector.load %arg17[%c1_165, %c0_166, %c0_167] : memref<2x1x32xf32, #tpu.memory_space<vmem>>, vector<1x1x32xf32>
    %435 = vector.shape_cast %434 : vector<1x1x32xf32> to vector<1x32xf32>
    %cst_168 = arith.constant dense<0.000000e+00> : vector<16xf32>
    %436 = vector.multi_reduction <add>, %431, %cst_168 [1] : vector<16x32xf32> to vector<16xf32>
    %437 = vector.shape_cast %436 : vector<16xf32> to vector<16x1xf32>
    %cst_169 = arith.constant 3.200000e+01 : f32
    %438 = vector.broadcast %cst_169 : f32 to vector<16x1xf32>
    %439 = arith.divf %437, %438 : vector<16x1xf32>
    %440 = vector.broadcast %439 : vector<16x1xf32> to vector<16x32xf32>
    %441 = arith.subf %431, %440 : vector<16x32xf32>
    %442 = arith.mulf %441, %441 : vector<16x32xf32>
    %cst_170 = arith.constant dense<0.000000e+00> : vector<16xf32>
    %443 = vector.multi_reduction <add>, %442, %cst_170 [1] : vector<16x32xf32> to vector<16xf32>
    %444 = vector.shape_cast %443 : vector<16xf32> to vector<16x1xf32>
    %cst_171 = arith.constant 3.200000e+01 : f32
    %445 = vector.broadcast %cst_171 : f32 to vector<16x1xf32>
    %446 = arith.divf %444, %445 : vector<16x1xf32>
    %cst_172 = arith.constant 9.99999996E-13 : f32
    %447 = vector.broadcast %cst_172 : f32 to vector<16x1xf32>
    %448 = arith.addf %446, %447 : vector<16x1xf32>
    %449 = math.rsqrt %448 : vector<16x1xf32>
    %450 = vector.broadcast %439 : vector<16x1xf32> to vector<16x32xf32>
    %451 = arith.subf %431, %450 : vector<16x32xf32>
    %452 = vector.broadcast %449 : vector<16x1xf32> to vector<16x32xf32>
    %453 = arith.mulf %451, %452 : vector<16x32xf32>
    %454 = vector.broadcast %433 : vector<1x32xf32> to vector<16x32xf32>
    %455 = arith.mulf %453, %454 : vector<16x32xf32>
    %456 = vector.broadcast %435 : vector<1x32xf32> to vector<16x32xf32>
    %457 = arith.addf %455, %456 : vector<16x32xf32>
    %458 = vector.extract_strided_slice %457 {offsets = [0, 0], sizes = [1, 32], strides = [1, 1]} : vector<16x32xf32> to vector<1x32xf32>
    %459 = vector.extract_strided_slice %457 {offsets = [8, 0], sizes = [1, 32], strides = [1, 1]} : vector<16x32xf32> to vector<1x32xf32>
    %460 = tpu.concatenate %458, %459 in 0 : vector<1x32xf32>, vector<1x32xf32> -> vector<2x32xf32>
    %c0_173 = arith.constant 0 : index
    %c0_174 = arith.constant 0 : index
    %461 = vector.load %arg18[%c0_173, %c0_174] : memref<32x128xf32, #tpu.memory_space<vmem>>, vector<32x128xf32>
    %cst_175 = arith.constant dense<0.000000e+00> : vector<2x128xf32>
    %462 = tpu.matmul %460, %461, %cst_175 {dimension_numbers = #tpu.dot_dimension_numbers<[1], [0], [0], [1], [0, 0, 1, 1], [], []>} : vector<2x32xf32>, vector<32x128xf32>, vector<2x128xf32> -> vector<2x128xf32>
    %c0_176 = arith.constant 0 : index
    %c0_177 = arith.constant 0 : index
    %463 = vector.load %arg19[%c0_176, %c0_177] : memref<1x128xf32, #tpu.memory_space<vmem>>, vector<1x128xf32>
    %464 = vector.broadcast %463 : vector<1x128xf32> to vector<2x128xf32>
    %465 = arith.addf %462, %464 : vector<2x128xf32>
    %466 = tpu.concatenate %465, %465, %465, %465 in 0 : vector<2x128xf32>, vector<2x128xf32>, vector<2x128xf32>, vector<2x128xf32> -> vector<8x128xf32>
    %c0_178 = arith.constant 0 : index
    %c0_179 = arith.constant 0 : index
    %467 = vector.load %arg20[%c0_178, %c0_179] : memref<8x128xf32, #tpu.memory_space<vmem>>, vector<8x128xf32>
    tpu.vector_store %arg20[%c0_178, %c0_179], %466 {strides = array<i32>} : memref<8x128xf32, #tpu.memory_space<vmem>>, vector<8x128xf32>,
    return
  }
}

</mosaic_0001>

<bundles_post_ra>
// kernel: nlp_classification_forward.1
= control target key start
LH: loop header
LB: loop body
LE: loop exit
PB: predicated region body
PF: predicated region fallthrough
CT: control target
= control target key end

     0   :  { %v4847_v0 = vmov 0   ;;  %v4848_v9 = vmov 0.0   ;;  %vm103_vm0 = vcmask 1043456   ;;  %v68_v23 = vlaneseq  ;;  %s4856_s29 = smov 112   ;;  %s4857_s30 = smov 56   ;;  %s5591_s0 = inlined_call_operand.vmem [shape: s32[16,1], index: 0, kind: input, shape index: {}]   ;;  %s5592_s2 = inlined_call_operand.vmem [shape: f32[100,32], index: 2, kind: input, shape index: {}]   ;;  %s5593_s3 = inlined_call_operand.vmem [shape: f32[16,32], index: 3, kind: input, shape index: {}]   ;;  %s5594_s6 = inlined_call_operand.vmem [shape: bf16[2,32,128], index: 6, kind: input, shape index: {}]   ;;  %s5595_s4 = inlined_call_operand.vmem [shape: f32[1,32], index: 4, kind: input, shape index: {}]   ;;  %s5596_s5 = inlined_call_operand.vmem [shape: f32[1,32], index: 5, kind: input, shape index: {}]   ;;  %s5597_s7 = inlined_call_operand.vmem [shape: f32[2,1,128], index: 7, kind: input, shape index: {}]   ;;  %s5598_s1 = inlined_call_operand.vmem [shape: s32[2,8], index: 1, kind: input, shape index: {}]   ;;  %s5599_s8 = inlined_call_operand.vmem [shape: bf16[2,4,8,32], index: 8, kind: input, shape index: {}]   ;;  %s5600_s9 = inlined_call_operand.vmem [shape: f32[2,1,32], index: 9, kind: input, shape index: {}]   ;;  %s5601_s12 = inlined_call_operand.vmem [shape: bf16[2,32,64], index: 12, kind: input, shape index: {}]   ;;  %s5602_s10 = inlined_call_operand.vmem [shape: f32[2,1,32], index: 10, kind: input, shape index: {}]   ;;  %s5603_s11 = inlined_call_operand.vmem [shape: f32[2,1,32], index: 11, kind: input, shape index: {}]   ;;  %s5604_s14 = inlined_call_operand.vmem [shape: bf16[2,64,32], index: 14, kind: input, shape index: {}]   ;;  %s5605_s13 = inlined_call_operand.vmem [shape: f32[2,1,64], index: 13, kind: input, shape index: {}]   ;;  %s5606_s15 = inlined_call_operand.vmem [shape: f32[2,1,32], index: 15, kind: input, shape index: {}]   ;;  %s5607_s16 = inlined_call_operand.vmem [shape: f32[2,1,32], index: 16, kind: input, shape index: {}]   ;;  %s5608_s17 = inlined_call_operand.vmem [shape: f32[2,1,32], index: 17, kind: input, shape index: {}]   ;;  %s5609_s18 = inlined_call_operand.vmem [shape: f32[32,128], index: 18, kind: input, shape index: {}]   ;;  %s5610_s19 = inlined_call_operand.vmem [shape: f32[1,128], index: 19, kind: input, shape index: {}]   ;;  %s5611_s20 = inlined_call_operand.vmem [shape: f32[8,128], index: 20, kind: output, shape index: {}]  }
   0x1   :  { %5619 = sst [smem:[#allocation2_spill]] %s5591_s0  ;;  %4738 = vset.pattern.permute.xlu0 %v4847_v0  ;;  %4417 = vmatprep.subr.bf16.mxu1 %v4848_v9  ;;  %vm96_vm1 = vcmask 818176   ;;  %vm184_vm4 = vcmask 261120   ;;  %vm4849_vm5 = vmmov 0   ;;  %v4141_v60 = vld [vmem:[%s5596_s5] ss:$0 sm:$0xff] }
   0x2   :  { %5620 = sst [smem:[#allocation3_spill]] %s5592_s2  ;;  %s5624_s23 = sld [smem:[#allocation2_spill]]  ;;  %v69_v24 = vand.u32 127, %v68_v23  ;;  %4421 = vmatprep.mubr.msk.bf16.mxu1 %vm4849_vm5, %v4848_v9  ;;  %vm331_vm6 = vcmask 64512   ;;  %vm2051_vm7 = vcmask 523264   ;;  %vm4032_vm8 = vcmask 1040384  }
   0x3   :  { %5621 = sst [smem:[#allocation4_spill]] %s5593_s3  ;;  %s5625_s25 = sld [smem:[#allocation3_spill]]  ;;  %vm4125_vm9 = vcmask 1041408   ;;  %vm4128_vm10 = vcmask 1045504  }
   0x4   :  { %5622 = sst [smem:[#allocation5_spill]] %s5594_s6  ;;  %s4850_s5 = smov 64  }
   0x5   :  { %5623 = sst [smem:[#allocation6_spill]] %s5595_s4  ;;  %s5627_s27 = sld [smem:[#allocation5_spill]] }
   0x6   :  { %s5628_s0 = sld [smem:[#allocation6_spill]]  ;;  %s4854_s6 = smov 120  }
   0x7   :  { %s4855_s4 = smov 80   ;;  %s4859_s21 = smov 48  }
   0x8   :  { %v66_v1 = vld [vmem:[%s5624_s23] sm:$0xff]  ;;  %v67_v6 = vld [vmem:[%s5624_s23 + $0x8] sm:$0xff]  ;;  %s5626_s23 = sld [smem:[#allocation4_spill]]  ;;  %s5617_s2 = smov 104  }
   0x9   :  { %v82_v2 = vld [vmem:[%s5625_s25] sm:$0xff]  ;;  %71 = vperm.xlu0 %4738, %v66_v1   ;;  %v83_v3 = vld [vmem:[%s5625_s25 + $0x8] sm:$0xff]  ;;  %v84_v4 = vld [vmem:[%s5625_s25 + $0x10] sm:$0xff]  ;;  %s5615_s22 = smov 40  }
   0xa   :  { %v85_v5 = vld [vmem:[%s5625_s25 + $0x18] sm:$0xff]  ;;  %v4692_v7 = vpack.c.bf16 %v83_v3, %v82_v2  ;;  %v86_v10 = vld [vmem:[%s5625_s25 + $0x20] sm:$0xff]  ;;  %v87_v11 = vld [vmem:[%s5625_s25 + $0x28] sm:$0xff] }
   0xb   :  { %v4696_v8 = vpack.c.bf16 %v85_v5, %v84_v4  ;;  %v4700_v12 = vpack.c.bf16 %v87_v11, %v86_v10  ;;  %v88_v13 = vld [vmem:[%s5625_s25 + $0x30] sm:$0xff]  ;;  %v89_v14 = vld [vmem:[%s5625_s25 + $0x38] sm:$0xff]  ;;  %v90_v16 = vld [vmem:[%s5625_s25 + $0x40] sm:$0xff] }
   0xc   :  { %4693 = vmatprep.subr.bf16.mxu0 %v4692_v7  ;;  %v4704_v15 = vpack.c.bf16 %v89_v14, %v88_v13  ;;  %v91_v17 = vld [vmem:[%s5625_s25 + $0x48] sm:$0xff]  ;;  %v92_v19 = vld [vmem:[%s5625_s25 + $0x50] sm:$0xff]  ;;  %v93_v20 = vld [vmem:[%s5625_s25 + $0x58] sm:$0xff]  ;;  %v4852_v14 = vmov 1966171168  }
   0xd   :  { %74 = vperm.xlu0 %4738, %v67_v6   ;;  %4695 = vmatpush3.bf16.msra.mxu0 %v4692_v7  ;;  %v4708_v18 = vpack.c.bf16 %v91_v17, %v90_v16  ;;  %v4712_v21 = vpack.c.bf16 %v93_v20, %v92_v19  ;;  %v94_v22 = vld [vmem:[%s5625_s25 + $0x60] sm:$0xf]  ;;  %v4740_v47 = vld [vmem:[%s5627_s27 + $0x8] sm:$0xff]   ;;  %s4851_s25 = smov 96  }
   0xe   :  { %4697 = vmatprep.subr.bf16.mxu0 %v4696_v8  ;;  %v95_v29 = vld [vmem:[%s5626_s23] sm:$0xff] }
   0xf   :  { %v4739_v46 = vld [vmem:[%s5627_s27] sm:$0xff]  }
  0x10   :  { %4418 = vmatpush3.bf16.msra.mxu1 %v4739_v46  ;;  %v4140_v56 = vld [vmem:[%s5628_s0] ss:$0 sm:$0xff]  ;;  %s4858_s0 = smov 72  }
  0x11   :  { %4699 = vmatpush3.bf16.msra.mxu0 %v4696_v8  ;;  %4419 = vmatprep.subr.bf16.mxu1 %v4848_v9  ;;  %v4142_v1 = vld [vmem:[%s5597_s7] ss:$0 sm:$0xff] }
  0x12   :  { %4701 = vmatprep.subr.bf16.mxu0 %v4700_v12 }
  0x14   :  { %4420 = vmatpush3.bf16.msra.mxu1 %v4740_v47 }
  0x15   :  { %4703 = vmatpush3.bf16.msra.mxu0 %v4700_v12  ;;  %4430 = vmatprep.subr.mxu1 %v4848_v9  ;;  %v228_v12 = vld [vmem:[%s5598_s1] sm:$0x3]  ;;  %s4853_s1 = smov 88  }
  0x16   :  { %4705 = vmatprep.subr.bf16.mxu0 %v4704_v15  ;;  %v229_v13 = vcvt.s32.f32 %v228_v12 }
  0x18   :  { %v230_v16 = vsub.f32 1.0, %v229_v13 }
  0x19   :  { %4707 = vmatpush3.bf16.msra.mxu0 %v4704_v15  ;;  %v234_v15 = vunpack.c.l.s4 %v4852_v14 }
  0x1a   :  { %4709 = vmatprep.subr.bf16.mxu0 %v4708_v18  ;;  %v231_v19 = vmul.f32 -1e+09, %v230_v16 }
  0x1b   :  { %v235_v17 = vunpack.c.0.s8 %v234_v15 }
  0x1d   :  { %4711 = vmatpush3.bf16.msra.mxu0 %v4708_v18  ;;  %v237_v18 = vshrl.u32 %v68_v23, 7 }
  0x1e   :  { %4713 = vmatprep.subr.bf16.mxu0 %v4712_v21 }
  0x1f   :  { %v238_v20 = vsub.s32 %v235_v17, %v237_v18 }
  0x21   :  { %4715 = vmatpush3.bf16.msra.mxu0 %v4712_v21  ;;  %v239_v21 = vrot.slane %v231_v19, %v238_v20 }
  0x22   :  { %4412 = vmatprep.subr.msk.mxu0 %vm103_vm0, %v94_v22 }
  0x25   :  { %4413 = vmatpush3.msk.msra.mxu0 %vm103_vm0, %v94_v22  ;;  %v240_v22 = vcombine.high %v239_v21, %v239_v21 }
  0x26   :  { %4425 = vmatprep.subr.mxu0 %v4848_v9 }
  0x88   :  { %v72_v25 = vpop.permute.xlu0 %71 }
  0x89   :  { %vm76_vm2 = vcmp.eq.s32.totalorder %v72_v25, %v69_v24  ;;  %v487_v25 = vsub.s32 0, %v237_v18 }
  0x8a   :  { %v4135_v26 = vsel %vm76_vm2, 1.0, %v4848_v9 }
  0x8b   :  { %4414 = vmatprep.mubr.msk.f32.mxu0 %vm96_vm1, %v4135_v26  ;;  %v254_v26 = vrot.slane %v240_v22, %v238_v20 }
  0x8c   :  { %v75_v27 = vpop.permute.xlu0 %74 }
  0x8d   :  { %vm77_vm3 = vcmp.eq.s32.totalorder %v75_v27, %v69_v24  ;;  %v247_v24 = vrot.slane %v239_v21, %v238_v20 }
  0x8e   :  { %v4136_v28 = vsel %vm77_vm3, 1.0, %v4848_v9 }
  0x8f   :  { %4415 = vmatmul.mubr.msk.f32.vlgmr.msra.gmra.mrb[0].mxu0 %vm96_vm1, %v4136_v28  ;;  %v5084_v27 = vrot.slane %v247_v24, %v487_v25 }
  0x90   :  { %4427 = vmatprep.mubr.msk.f32.mxu0 %vm4849_vm5, %v4848_v9 }
 0x162   :  { %v4416_v30 = vpop.f32.mrb[0].mxu0 }
 0x163   :  { %v173_v31 = vpop.f32.mrb[1].mxu0  ;;  %v179_v33 = vadd.f32 %v4416_v30, %v95_v29 }
 0x164   :  { %v174_v32 = vadd.f32 %v173_v31, %v95_v29  ;;  %v5086_v31 = vrot.slane %v254_v26, %v487_v25 }
 0x165   :  { %v188_v35 = vsel %vm184_vm4, %v179_v33, 0.0 }
 0x166   :  { %v185_v34 = vsel %vm184_vm4, %v174_v32, 0.0 }
 0x167   :  { %186 = vadd.xlane.f32.xlu1 %v185_v34 }
 0x16b   :  { %189 = vadd.xlane.f32.xlu1 %v188_v35 }
 0x1f4   :  { %v187_v36 = vpop.xlane.xlu1 %186 }
 0x1f5   :  { %v192_v37 = vmul.f32 0.03125, %v187_v36 }
 0x1f7   :  { %v194_v38 = vsub.f32 %v174_v32, %v192_v37 }
 0x1f8   :  { %v190_v39 = vpop.xlane.xlu1 %189 }
 0x1f9   :  { %v193_v40 = vmul.f32 0.03125, %v190_v39  ;;  %v196_v41 = vmul.f32 %v194_v38, %v194_v38 }
 0x1fb   :  { %v195_v42 = vsub.f32 %v179_v33, %v193_v40  ;;  %v198_v43 = vsel %vm184_vm4, %v196_v41, 0.0 }
 0x1fc   :  { %199 = vadd.xlane.f32.xlu0 %v198_v43 }
 0x1fd   :  { %v197_v44 = vmul.f32 %v195_v42, %v195_v42 }
 0x1ff   :  { %v201_v45 = vsel %vm184_vm4, %v197_v44, 0.0 }
 0x200   :  { %202 = vadd.xlane.f32.xlu1 %v201_v45 }
 0x289   :  { %v200_v48 = vpop.xlane.xlu0 %199 }
 0x28a   :  { %v204_v49 = vmul.f32 0.03125, %v200_v48 }
 0x28c   :  { %v206_v50 = vadd.f32 1e-12, %v204_v49 }
 0x28d   :  { %v203_v51 = vpop.xlane.xlu1 %202 }
 0x28e   :  { %4755 = vrsqrt.f32 %v206_v50  ;;  %v205_v52 = vmul.f32 0.03125, %v203_v51 }
 0x290   :  { %v207_v53 = vadd.f32 1e-12, %v205_v52 }
 0x292   :  { %4757 = vrsqrt.f32 %v207_v53 }
 0x298   :  { %v4756_v54 = vpop.eup %4755 }
 0x299   :  { %v210_v55 = vmul.f32 %v4756_v54, %v194_v38 }
 0x29b   :  { %v218_v59 = vmul.f32 %v4140_v56, %v210_v55 }
 0x29c   :  { %v4758_v57 = vpop.eup %4757 }
 0x29d   :  { %v211_v58 = vmul.f32 %v4758_v57, %v195_v42  ;;  %v5045_v62 = vadd.f32 %v4141_v60, %v218_v59  ;;  %v323_v59 = vld [vmem:[%s5599_s8] sm:$0xf] }
 0x29f   :  { %v219_v61 = vmul.f32 %v4140_v56, %v211_v58 }
 0x2a1   :  { %v5047_v63 = vadd.f32 %v4141_v60, %v219_v61  ;;  %v676_v60 = vsel %vm103_vm0, %v323_v59, 0 }
 0x2a3   :  { %v255_v0 = vpack.c.bf16 %v5047_v63, %v5045_v62 }
 0x2a5   :  { %4422 = vmatmul.mubr.msk.bf16.vlgmr.msra.gmra.mrb[0].mxu1 %vm184_vm4, %v255_v0 }
 0x2a6   :  { %4432 = vmatprep.mubr.msk.f32.mxu1 %vm4849_vm5, %v4848_v9 }
 0x378   :  { %v316_v2 = vpop.f32.mrb[0].mxu1 }
 0x379   :  { %v5057_v3 = vadd.f32 %v4142_v1, %v316_v2  ;;  %v4423_v4 = vpop.f32.mrb[1].mxu1 }
 0x37a   :  { %v319_v5 = vpop.f32.mrb[2].mxu1 }
 0x37b   :  { %519 = vrot.lane.b32.xlu0 %v5057_v3, %s4850_s5  ;;  %329 = vrot.lane.b32.xlu1 %v5057_v3, %s4851_s25  ;;  %v4424_v6 = vpop.f32.mrb[3].mxu1  ;;  %v5063_v7 = vadd.f32 %v4142_v1, %v319_v5 }
 0x37f   :  { %407 = vrot.lane.b32.xlu1 %v5063_v7, %s4851_s25 }
 0x3ed   :  { %v330_v8 = vpop.permute.xlu1 %329  ;;  %v520_v11 = vpop.permute.xlu0 %519 }
 0x3ee   :  { %4426 = vmatpush3.xpose.msk.msra.mxu0 %vm331_vm6, %v330_v8 }
 0x3ef   :  { %4445 = vmatprep.subr.bf16.mxu0 %v4848_v9 }
 0x3f1   :  { %4428 = vmatmul.mubr.msk.f32.vlgmr.msra.gmra.mrb[2].mxu0 %vm331_vm6, %v5057_v3  ;;  %v408_v10 = vpop.permute.xlu1 %407 }
 0x3f2   :  { %4431 = vmatpush3.xpose.msk.msra.mxu1 %vm331_vm6, %v408_v10  ;;  %4447 = vmatprep.mubr.msk.bf16.mxu0 %vm4849_vm5, %v4848_v9 }
 0x3f3   :  { %4435 = vmatprep.subr.mxu1 %v4848_v9  ;;  %4446 = vmatpush3.bf16.msra.mxu0 %v676_v60 }
 0x3f4   :  { %4461 = vmatprep.subr.mxu0 %v4848_v9 }
 0x3f5   :  { %4433 = vmatmul.mubr.msk.f32.vlgmr.msra.gmra.mrb[4].mxu1 %vm331_vm6, %v5063_v7 }
 0x3f6   :  { %4436 = vmatpush3.msra.mxu1 %v520_v11  ;;  %4437 = vmatprep.mubr.msk.f32.mxu1 %vm4849_vm5, %v4848_v9 }
 0x3f7   :  { %4440 = vmatprep.subr.mxu1 %v4848_v9 }
 0x4c4   :  { %v402_v28 = vpop.f32.mrb[2].mxu0 }
 0x4c5   :  { %v483_v29 = vmul.f32 0.35355338, %v402_v28  ;;  %v4429_v30 = vpop.f32.mrb[3].mxu0 }
 0x4c7   :  { %v495_v32 = vadd.f32 %v5084_v27, %v483_v29 }
 0x4c8   :  { %v479_v33 = vpop.f32.mrb[4].mxu1 }
 0x4c9   :  { %v484_v34 = vmul.f32 0.35355338, %v479_v33  ;;  %v4434_v35 = vpop.f32.mrb[5].mxu1  ;;  %v497_v23 = vsel %vm331_vm6, %v495_v32, -inf }
 0x4ca   :  { %498 = vmax.xlane.f32.xlu1 %v497_v23 }
 0x4cb   :  { %v496_v36 = vadd.f32 %v5086_v31, %v484_v34 }
 0x4cd   :  { %v500_v37 = vsel %vm331_vm6, %v496_v36, -inf }
 0x4ce   :  { %501 = vmax.xlane.f32.xlu0 %v500_v37 }
 0x4db   :  { %595 = vrot.lane.b32.xlu1 %v5063_v7, %s4850_s5 }
 0x4e4   :  { %729 = vrot.lane.b32.xlu0 %v5057_v3, %s4853_s1 }
 0x557   :  { %v499_v38 = vpop.xlane.xlu1 %498 }
 0x558   :  { %v503_v39 = vsub.f32 %v495_v32, %v499_v38 }
 0x55a   :  { %v505_v40 = vmul.f32 1.442695, %v503_v39 }
 0x55b   :  { %v502_v43 = vpop.xlane.xlu0 %501  ;;  %v596_v52 = vpop.permute.xlu1 %595 }
 0x55c   :  { %4759 = vpow2.f32 %v505_v40  ;;  %v504_v44 = vsub.f32 %v496_v36, %v502_v43 }
 0x55e   :  { %v507_v45 = vmul.f32 1.442695, %v504_v44 }
 0x55f   :  { %v730_v48 = vpop.permute.xlu0 %729 }
 0x560   :  { %4761 = vpow2.f32 %v507_v45 }
 0x566   :  { %v4760_v41 = vpop.eup %4759 }
 0x567   :  { %v509_v42 = vsel %vm331_vm6, %v4760_v41, 0.0 }
 0x568   :  { %510 = vadd.xlane.f32.xlu0 %v509_v42 }
 0x56a   :  { %v4762_v46 = vpop.eup %4761 }
 0x56b   :  { %v512_v47 = vsel %vm331_vm6, %v4762_v46, 0.0 }
 0x57e   :  { %727 = vrot.lane.b32.xlu0 %v5057_v3, %s4854_s6 }
 0x59d   :  { %513 = vadd.xlane.f32.xlu0 %v512_v47 }
 0x5b3   :  { %807 = vrot.lane.b32.xlu0 %v5063_v7, %s4853_s1 }
 0x5b7   :  { %805 = vrot.lane.b32.xlu0 %v5063_v7, %s4854_s6 }
 0x5f5   :  { %v511_v49 = vpop.xlane.xlu0 %510 }
 0x5f6   :  { %4763 = vrcp.f32 %v511_v49 }
 0x5f9   :  { %v728_v53 = vpop.permute.xlu0 %727 }
 0x600   :  { %v4764_v50 = vpop.eup %4763 }
 0x601   :  { %v517_v51 = vmul.f32 %v4764_v50, %v4760_v41 }
 0x603   :  { %4438 = vmatmul.mubr.msk.f32.vlgmr.msra.gmra.mrb[6].mxu1 %vm331_vm6, %v517_v51 }
 0x604   :  { %4441 = vmatpush3.msra.mxu1 %v596_v52  ;;  %4442 = vmatprep.mubr.msk.f32.mxu1 %vm4849_vm5, %v4848_v9 }
 0x605   :  { %4451 = vmatprep.subr.mxu1 %v4848_v9 }
 0x62a   :  { %v514_v54 = vpop.xlane.xlu0 %513 }
 0x62b   :  { %4765 = vrcp.f32 %v514_v54 }
 0x62e   :  { %v808_v57 = vpop.permute.xlu0 %807 }
 0x632   :  { %v806_v58 = vpop.permute.xlu0 %805 }
 0x635   :  { %v4766_v55 = vpop.eup %4765 }
 0x636   :  { %v518_v56 = vmul.f32 %v4766_v55, %v4762_v46 }
 0x638   :  { %4443 = vmatmul.mubr.msk.f32.vlgmr.msra.gmra.mrb[8].mxu1 %vm331_vm6, %v518_v56 }
 0x639   :  { %4452 = vmatpush3.xpose.msk.msra.mxu1 %vm331_vm6, %v730_v48  ;;  %4453 = vmatprep.mubr.msk.f32.mxu1 %vm4849_vm5, %v4848_v9 }
 0x63a   :  { %4456 = vmatprep.subr.mxu1 %v4848_v9 }
 0x63c   :  { %4454 = vmatmul.mubr.msk.f32.vlgmr.msra.gmra.mrb[10].mxu1 %vm331_vm6, %v728_v53 }
 0x63d   :  { %4457 = vmatpush3.xpose.msk.msra.mxu1 %vm331_vm6, %v808_v57  ;;  %4458 = vmatprep.mubr.msk.f32.mxu1 %vm4849_vm5, %v4848_v9  ;;  %v324_v57 = vld [vmem:[%s5599_s8 + $0x4] sm:$0xf] }
 0x63e   :  { %4466 = vmatprep.subr.mxu1 %v4848_v9 }
 0x640   :  { %4459 = vmatmul.mubr.msk.f32.vlgmr.msra.gmra.mrb[12].mxu1 %vm331_vm6, %v806_v58  ;;  %v1066_v58 = vsel %vm103_vm0, %v324_v57, 0 }
 0x641   :  { %4468 = vmatprep.mubr.msk.f32.mxu1 %vm4849_vm5, %v4848_v9 }
 0x6d6   :  { %v591_v61 = vpop.f32.mrb[6].mxu1 }
 0x6d7   :  { %v4439_v0 = vpop.f32.mrb[7].mxu1 }
 0x70b   :  { %v667_v1 = vpop.f32.mrb[8].mxu1 }
 0x70c   :  { %v671_v2 = vpack.c.bf16 %v667_v1, %v591_v61  ;;  %v4444_v4 = vpop.f32.mrb[9].mxu1 }
 0x70e   :  { %4448 = vmatmul.mubr.msk.bf16.vlgmr.msra.gmra.mrb[4].mxu0 %vm331_vm6, %v671_v2 }
 0x70f   :  { %v801_v5 = vpop.f32.mrb[10].mxu1  ;;  %4463 = vmatprep.mubr.msk.f32.mxu0 %vm4849_vm5, %v4848_v9 }
 0x710   :  { %v4455_v6 = vpop.f32.mrb[11].mxu1  ;;  %v883_v24 = vmul.f32 0.35355338, %v801_v5 }
 0x712   :  { %v885_v25 = vadd.f32 %v883_v24, %v5084_v27 }
 0x713   :  { %v879_v8 = vpop.f32.mrb[12].mxu1 }
 0x714   :  { %v884_v10 = vmul.f32 0.35355338, %v879_v8  ;;  %v4460_v11 = vpop.f32.mrb[13].mxu1  ;;  %v887_v26 = vsel %vm331_vm6, %v885_v25, -inf }
 0x716   :  { %v886_v12 = vadd.f32 %v884_v10, %v5086_v31 }
 0x718   :  { %v890_v13 = vsel %vm331_vm6, %v886_v12, -inf }
 0x719   :  { %891 = vmax.xlane.f32.xlu1 %v890_v13 }
 0x72a   :  { %1113 = vrot.lane.b32.xlu1 %v5057_v3, %s4855_s4 }
 0x72e   :  { %1111 = vrot.lane.b32.xlu1 %v5057_v3, %s4856_s29 }
 0x732   :  { %1189 = vrot.lane.b32.xlu1 %v5063_v7, %s4856_s29 }
 0x7a6   :  { %v892_v14 = vpop.xlane.xlu1 %891 }
 0x7a7   :  { %v894_v15 = vsub.f32 %v886_v12, %v892_v14 }
 0x7a9   :  { %v897_v16 = vmul.f32 1.442695, %v894_v15 }
 0x7aa   :  { %v1114_v30 = vpop.permute.xlu1 %1113 }
 0x7ab   :  { %4767 = vpow2.f32 %v897_v16 }
 0x7ae   :  { %v1112_v34 = vpop.permute.xlu1 %1111 }
 0x7b2   :  { %v1190_v23 = vpop.permute.xlu1 %1189 }
 0x7b5   :  { %v4768_v17 = vpop.eup %4767 }
 0x7b6   :  { %v902_v18 = vsel %vm331_vm6, %v4768_v17, 0.0 }
 0x7b7   :  { %903 = vadd.xlane.f32.xlu0 %v902_v18 }
 0x7cd   :  { %985 = vrot.lane.b32.xlu0 %v5063_v7, %s4857_s30 }
 0x7d1   :  { %1191 = vrot.lane.b32.xlu0 %v5063_v7, %s4855_s4 }
 0x7e1   :  { %v5142_v19 = vpop.f32.mrb[4].mxu0 }
 0x7e2   :  { %v4449_v20 = vpop.f32.mrb[5].mxu0 }
 0x7e3   :  { %v5144_v21 = vpop.f32.mrb[6].mxu0 }
 0x7e4   :  { %v4450_v22 = vpop.f32.mrb[7].mxu0 }
 0x7f0   :  { %888 = vmax.xlane.f32.xlu0 %v887_v26 }
 0x844   :  { %v904_v28 = vpop.xlane.xlu0 %903 }
 0x845   :  { %4769 = vrcp.f32 %v904_v28  ;;  %v325_v28 = vld [vmem:[%s5599_s8 + $0x8] sm:$0xf] }
 0x848   :  { %v986_v29 = vpop.permute.xlu0 %985 }
 0x849   :  { %4467 = vmatpush3.msra.mxu1 %v986_v29  ;;  %v4153_v29 = vld [vmem:[%s5600_s9] ss:$0 sm:$0xff] }
 0x84a   :  { %4477 = vmatprep.subr.mxu1 %v4848_v9 }
 0x84c   :  { %v1192_v35 = vpop.permute.xlu0 %1191 }
 0x84f   :  { %v4770_v32 = vpop.eup %4769 }
 0x850   :  { %v908_v33 = vmul.f32 %v4770_v32, %v4768_v17  ;;  %v725_v32 = vadd.f32 %v4153_v29, %v5142_v19 }
 0x852   :  { %4469 = vmatmul.mubr.msk.f32.vlgmr.msra.gmra.mrb[14].mxu1 %vm331_vm6, %v908_v33 }
 0x853   :  { %4478 = vmatpush3.xpose.msk.msra.mxu1 %vm331_vm6, %v1114_v30  ;;  %4479 = vmatprep.mubr.msk.f32.mxu1 %vm4849_vm5, %v4848_v9  ;;  %v1450_v30 = vsel %vm103_vm0, %v325_v28, 0 }
 0x854   :  { %4482 = vmatprep.subr.mxu1 %v4848_v9 }
 0x856   :  { %4480 = vmatmul.mubr.msk.f32.vlgmr.msra.gmra.mrb[16].mxu1 %vm331_vm6, %v1112_v34  ;;  %v726_v34 = vadd.f32 %v4153_v29, %v5144_v21 }
 0x857   :  { %4483 = vmatpush3.xpose.msk.msra.mxu1 %vm331_vm6, %v1192_v35  ;;  %4484 = vmatprep.mubr.msk.f32.mxu1 %vm4849_vm5, %v4848_v9 }
 0x858   :  { %4492 = vmatprep.subr.mxu1 %v4848_v9 }
 0x85a   :  { %4485 = vmatmul.mubr.msk.f32.vlgmr.msra.gmra.mrb[18].mxu1 %vm331_vm6, %v1190_v23 }
 0x85b   :  { %4494 = vmatprep.mubr.msk.f32.mxu1 %vm4849_vm5, %v4848_v9 }
 0x87d   :  { %v889_v36 = vpop.xlane.xlu0 %888 }
 0x87e   :  { %v893_v37 = vsub.f32 %v885_v25, %v889_v36 }
 0x880   :  { %v895_v38 = vmul.f32 1.442695, %v893_v37 }
 0x882   :  { %4771 = vpow2.f32 %v895_v38 }
 0x88c   :  { %v4772_v39 = vpop.eup %4771 }
 0x88d   :  { %v899_v40 = vsel %vm331_vm6, %v4772_v39, 0.0 }
 0x88e   :  { %900 = vadd.xlane.f32.xlu0 %v899_v40 }
 0x8a4   :  { %909 = vrot.lane.b32.xlu0 %v5057_v3, %s4857_s30 }
 0x8a8   :  { %1497 = vrot.lane.b32.xlu0 %v5057_v3, %s4858_s0 }
 0x8ac   :  { %1575 = vrot.lane.b32.xlu0 %v5063_v7, %s4858_s0 }
 0x91b   :  { %v901_v41 = vpop.xlane.xlu0 %900 }
 0x91c   :  { %4773 = vrcp.f32 %v901_v41 }
 0x91f   :  { %v910_v42 = vpop.permute.xlu0 %909 }
 0x920   :  { %4462 = vmatpush3.msra.mxu0 %v910_v42 }
 0x921   :  { %4471 = vmatprep.subr.bf16.mxu0 %v4848_v9 }
 0x923   :  { %v1498_v2 = vpop.permute.xlu0 %1497 }
 0x925   :  { %v1057_v43 = vpop.f32.mrb[14].mxu1 }
 0x926   :  { %v4774_v44 = vpop.eup %4773  ;;  %v4470_v45 = vpop.f32.mrb[15].mxu1 }
 0x927   :  { %v907_v46 = vmul.f32 %v4774_v44, %v4772_v39  ;;  %v1576_v4 = vpop.permute.xlu0 %1575 }
 0x929   :  { %4464 = vmatmul.mubr.msk.f32.vlgmr.msra.gmra.mrb[8].mxu0 %vm331_vm6, %v907_v46  ;;  %v1185_v47 = vpop.f32.mrb[16].mxu1 }
 0x92a   :  { %v1267_v48 = vmul.f32 0.35355338, %v1185_v47  ;;  %v4481_v49 = vpop.f32.mrb[17].mxu1  ;;  %4473 = vmatprep.mubr.msk.bf16.mxu0 %vm4849_vm5, %v4848_v9  ;;  %4472 = vmatpush3.bf16.msra.mxu0 %v1066_v58 }
 0x92b   :  { %4487 = vmatprep.subr.mxu0 %v4848_v9 }
 0x92c   :  { %v1269_v50 = vadd.f32 %v1267_v48, %v5084_v27 }
 0x92d   :  { %v1263_v51 = vpop.f32.mrb[18].mxu1 }
 0x92e   :  { %v1268_v52 = vmul.f32 0.35355338, %v1263_v51  ;;  %v4486_v53 = vpop.f32.mrb[19].mxu1  ;;  %v1271_v54 = vsel %vm331_vm6, %v1269_v50, -inf }
 0x92f   :  { %1272 = vmax.xlane.f32.xlu0 %v1271_v54 }
 0x930   :  { %v1270_v55 = vadd.f32 %v1268_v52, %v5086_v31 }
 0x932   :  { %v1274_v56 = vsel %vm331_vm6, %v1270_v55, -inf }
 0x933   :  { %1275 = vmax.xlane.f32.xlu1 %v1274_v56 }
 0x944   :  { %1369 = vrot.lane.b32.xlu1 %v5063_v7, %s4859_s21 }
 0x945   :  { %1293 = vrot.lane.b32.xlu0 %v5057_v3, %s4859_s21 }
 0x948   :  { %1495 = vrot.lane.b32.xlu1 %v5057_v3, %s5617_s2 }
 0x949   :  { %1677 = vrot.lane.b32.xlu0 %v5057_v3, %s5615_s22 }
 0x9bc   :  { %v1273_v5 = vpop.xlane.xlu0 %1272 }
 0x9bd   :  { %v1277_v6 = vsub.f32 %v1269_v50, %v1273_v5 }
 0x9bf   :  { %v1279_v8 = vmul.f32 1.442695, %v1277_v6 }
 0x9c0   :  { %v1276_v59 = vpop.xlane.xlu1 %1275  ;;  %v1294_v13 = vpop.permute.xlu0 %1293 }
 0x9c1   :  { %v1278_v60 = vsub.f32 %v1270_v55, %v1276_v59 }
 0x9c3   :  { %v1281_v61 = vmul.f32 1.442695, %v1278_v60 }
 0x9c4   :  { %v1370_v0 = vpop.permute.xlu1 %1369  ;;  %v1678_v52 = vpop.permute.xlu0 %1677 }
 0x9c5   :  { %4775 = vpow2.f32 %v1281_v61  ;;  %4493 = vmatpush3.msra.mxu1 %v1370_v0 }
 0x9c6   :  { %4503 = vmatprep.subr.mxu1 %v4848_v9  ;;  %4777 = vpow2.f32 %v1279_v8 }
 0x9c8   :  { %v1496_v16 = vpop.permute.xlu1 %1495 }
 0x9cf   :  { %v4776_v1 = vpop.eup %4775 }
 0x9d0   :  { %v1286_v3 = vsel %vm331_vm6, %v4776_v1, 0.0  ;;  %v4778_v14 = vpop.eup %4777 }
 0x9d1   :  { %1287 = vadd.xlane.f32.xlu1 %v1286_v3  ;;  %v1283_v15 = vsel %vm331_vm6, %v4778_v14, 0.0 }
 0x9e2   :  { %1573 = vrot.lane.b32.xlu1 %v5063_v7, %s5617_s2 }
 0x9fc   :  { %v981_v10 = vpop.f32.mrb[8].mxu0 }
 0x9fd   :  { %v1061_v11 = vpack.c.bf16 %v1057_v43, %v981_v10  ;;  %v4465_v12 = vpop.f32.mrb[9].mxu0 }
 0x9ff   :  { %4474 = vmatmul.mubr.msk.bf16.vlgmr.msra.gmra.mrb[12].mxu0 %vm331_vm6, %v1061_v11 }
 0xa00   :  { %4488 = vmatpush3.msra.mxu0 %v1294_v13  ;;  %4489 = vmatprep.mubr.msk.f32.mxu0 %vm4849_vm5, %v4848_v9 }
 0xa01   :  { %4497 = vmatprep.subr.bf16.mxu0 %v4848_v9 }
 0xa06   :  { %1284 = vadd.xlane.f32.xlu1 %v1283_v15  ;;  %v326_v15 = vld [vmem:[%s5599_s8 + $0xc] sm:$0xf] }
 0xa5e   :  { %v1288_v17 = vpop.xlane.xlu1 %1287 }
 0xa5f   :  { %4779 = vrcp.f32 %v1288_v17 }
 0xa62   :  { %v1574_v22 = vpop.permute.xlu1 %1573 }
 0xa69   :  { %v4780_v18 = vpop.eup %4779 }
 0xa6a   :  { %v1292_v20 = vmul.f32 %v4780_v18, %v4776_v1 }
 0xa6c   :  { %4495 = vmatmul.mubr.msk.f32.vlgmr.msra.gmra.mrb[20].mxu1 %vm331_vm6, %v1292_v20 }
 0xa6d   :  { %4504 = vmatpush3.xpose.msk.msra.mxu1 %vm331_vm6, %v1498_v2  ;;  %4505 = vmatprep.mubr.msk.f32.mxu1 %vm4849_vm5, %v4848_v9 }
 0xa6e   :  { %4508 = vmatprep.subr.mxu1 %v4848_v9 }
 0xa70   :  { %4506 = vmatmul.mubr.msk.f32.vlgmr.msra.gmra.mrb[22].mxu1 %vm331_vm6, %v1496_v16  ;;  %v1834_v16 = vsel %vm103_vm0, %v326_v15, 0 }
 0xa71   :  { %4509 = vmatpush3.xpose.msk.msra.mxu1 %vm331_vm6, %v1576_v4  ;;  %4510 = vmatprep.mubr.msk.f32.mxu1 %vm4849_vm5, %v4848_v9 }
 0xa72   :  { %4518 = vmatprep.subr.mxu1 %v4848_v9 }
 0xa74   :  { %4511 = vmatmul.mubr.msk.f32.vlgmr.msra.gmra.mrb[24].mxu1 %vm331_vm6, %v1574_v22 }
 0xa75   :  { %4520 = vmatprep.mubr.msk.f32.mxu1 %vm4849_vm5, %v4848_v9 }
 0xa93   :  { %v1285_v24 = vpop.xlane.xlu1 %1284 }
 0xa94   :  { %4781 = vrcp.f32 %v1285_v24 }
 0xa9e   :  { %v4782_v25 = vpop.eup %4781 }
 0xa9f   :  { %v1291_v26 = vmul.f32 %v4782_v25, %v4778_v14 }
 0xaa1   :  { %4490 = vmatmul.mubr.msk.f32.vlgmr.msra.gmra.mrb[10].mxu0 %vm331_vm6, %v1291_v26 }
 0xaa2   :  { %4499 = vmatprep.mubr.msk.bf16.mxu0 %vm4849_vm5, %v4848_v9  ;;  %4498 = vmatpush3.bf16.msra.mxu0 %v1450_v30 }
 0xaa3   :  { %4513 = vmatprep.subr.mxu0 %v4848_v9 }
 0xad2   :  { %v1102_v33 = vpop.f32.mrb[12].mxu0 }
 0xad3   :  { %v1109_v35 = vadd.f32 %v1102_v33, %v725_v32  ;;  %v4475_v23 = vpop.f32.mrb[13].mxu0 }
 0xad4   :  { %v1105_v36 = vpop.f32.mrb[14].mxu0 }
 0xad5   :  { %v1110_v37 = vadd.f32 %v1105_v36, %v726_v34  ;;  %v4476_v38 = vpop.f32.mrb[15].mxu0 }
 0xb3f   :  { %v1441_v39 = vpop.f32.mrb[20].mxu1 }
 0xb40   :  { %v4496_v40 = vpop.f32.mrb[21].mxu1 }
 0xb43   :  { %v1569_v41 = vpop.f32.mrb[22].mxu1 }
 0xb44   :  { %v1651_v42 = vmul.f32 0.35355338, %v1569_v41  ;;  %v4507_v43 = vpop.f32.mrb[23].mxu1 }
 0xb46   :  { %v1653_v44 = vadd.f32 %v1651_v42, %v5084_v27 }
 0xb47   :  { %v1647_v45 = vpop.f32.mrb[24].mxu1 }
 0xb48   :  { %v1652_v46 = vmul.f32 0.35355338, %v1647_v45  ;;  %v4512_v47 = vpop.f32.mrb[25].mxu1  ;;  %v1655_v19 = vsel %vm331_vm6, %v1653_v44, -inf  ;;  %v4742_v45 = vld [vmem:[%s5601_s12 + $0x8] sm:$0xff]  }
 0xb49   :  { %1656 = vmax.xlane.f32.xlu1 %v1655_v19 }
 0xb4a   :  { %v1654_v21 = vadd.f32 %v1652_v46, %v5086_v31 }
 0xb4c   :  { %v1658_v48 = vsel %vm331_vm6, %v1654_v21, -inf }
 0xb4d   :  { %1659 = vmax.xlane.f32.xlu1 %v1658_v48 }
 0xb74   :  { %v1365_v49 = vpop.f32.mrb[10].mxu0 }
 0xb75   :  { %v1445_v50 = vpack.c.bf16 %v1441_v39, %v1365_v49  ;;  %v4491_v51 = vpop.f32.mrb[11].mxu0 }
 0xb77   :  { %4500 = vmatmul.mubr.msk.bf16.vlgmr.msra.gmra.mrb[16].mxu0 %vm331_vm6, %v1445_v50 }
 0xb78   :  { %4514 = vmatpush3.msra.mxu0 %v1678_v52  ;;  %4515 = vmatprep.mubr.msk.f32.mxu0 %vm4849_vm5, %v4848_v9  ;;  %v4175_v52 = vld [vmem:[%s5602_s10] ss:$0 sm:$0xff] }
 0xb79   :  { %4523 = vmatprep.subr.bf16.mxu0 %v4848_v9 }
 0xbd6   :  { %v1657_v53 = vpop.xlane.xlu1 %1656 }
 0xbd7   :  { %v1661_v54 = vsub.f32 %v1653_v44, %v1657_v53 }
 0xbd9   :  { %v1663_v55 = vmul.f32 1.442695, %v1661_v54 }
 0xbda   :  { %v1660_v56 = vpop.xlane.xlu1 %1659 }
 0xbdb   :  { %4783 = vpow2.f32 %v1663_v55  ;;  %v1662_v57 = vsub.f32 %v1654_v21, %v1660_v56  ;;  %v4176_v56 = vld [vmem:[%s5603_s11] ss:$0 sm:$0xff] }
 0xbdd   :  { %v1665_v58 = vmul.f32 1.442695, %v1662_v57 }
 0xbdf   :  { %4785 = vpow2.f32 %v1665_v58 }
 0xbe5   :  { %v4784_v59 = vpop.eup %4783 }
 0xbe6   :  { %v1667_v60 = vsel %vm331_vm6, %v4784_v59, 0.0 }
 0xbe7   :  { %1668 = vadd.xlane.f32.xlu1 %v1667_v60 }
 0xbe9   :  { %v4786_v61 = vpop.eup %4785 }
 0xbea   :  { %v1670_v0 = vsel %vm331_vm6, %v4786_v61, 0.0 }
 0xbeb   :  { %1671 = vadd.xlane.f32.xlu1 %v1670_v0  ;;  %v4744_v0 = vld [vmem:[%s5604_s14 + $0x8] sm:$0xff]  }
 0xbfc   :  { %1753 = vrot.lane.b32.xlu1 %v5063_v7, %s5615_s22 }
 0xc4a   :  { %v1486_v1 = vpop.f32.mrb[16].mxu0 }
 0xc4b   :  { %v1493_v3 = vadd.f32 %v1486_v1, %v1109_v35  ;;  %v4501_v2 = vpop.f32.mrb[17].mxu0  ;;  %v4745_v1 = vld [vmem:[%s5604_s14 + $0x10] sm:$0xff]  }
 0xc4c   :  { %v1489_v4 = vpop.f32.mrb[18].mxu0  ;;  %v4177_v2 = vld [vmem:[%s5605_s13] ss:$0 sm:$0xff] }
 0xc4d   :  { %v1494_v5 = vadd.f32 %v1489_v4, %v1110_v37  ;;  %v4502_v6 = vpop.f32.mrb[19].mxu0 }
 0xc74   :  { %v1669_v8 = vpop.xlane.xlu1 %1668 }
 0xc75   :  { %4787 = vrcp.f32 %v1669_v8 }
 0xc78   :  { %v1672_v10 = vpop.xlane.xlu1 %1671 }
 0xc79   :  { %4789 = vrcp.f32 %v1672_v10 }
 0xc7c   :  { %v1754_v11 = vpop.permute.xlu1 %1753 }
 0xc7d   :  { %4519 = vmatpush3.msra.mxu1 %v1754_v11 }
 0xc7e   :  { %4529 = vmatprep.subr.bf16.mxu1 %v4848_v9 }
 0xc7f   :  { %v4788_v12 = vpop.eup %4787 }
 0xc80   :  { %v1675_v13 = vmul.f32 %v4788_v12, %v4784_v59 }
 0xc82   :  { %4516 = vmatmul.mubr.msk.f32.vlgmr.msra.gmra.mrb[20].mxu0 %vm331_vm6, %v1675_v13 }
 0xc83   :  { %v4790_v14 = vpop.eup %4789  ;;  %4525 = vmatprep.mubr.msk.bf16.mxu0 %vm4849_vm5, %v4848_v9  ;;  %4524 = vmatpush3.bf16.msra.mxu0 %v1834_v16 }
 0xc84   :  { %v1676_v7 = vmul.f32 %v4790_v14, %v4786_v61  ;;  %4537 = vmatprep.subr.bf16.mxu0 %v4848_v9  ;;  %v4743_v61 = vld [vmem:[%s5604_s14] sm:$0xff]  }
 0xc86   :  { %4521 = vmatmul.mubr.msk.f32.vlgmr.msra.gmra.mrb[26].mxu1 %vm331_vm6, %v1676_v7 }
 0xc87   :  { %4533 = vmatprep.mubr.msk.bf16.mxu1 %vm4849_vm5, %v4848_v9 }
 0xd55   :  { %v1749_v17 = vpop.f32.mrb[20].mxu0 }
 0xd56   :  { %v4517_v18 = vpop.f32.mrb[21].mxu0 }
 0xd59   :  { %v1825_v20 = vpop.f32.mrb[26].mxu1 }
 0xd5a   :  { %v1829_v22 = vpack.c.bf16 %v1825_v20, %v1749_v17  ;;  %v4522_v24 = vpop.f32.mrb[27].mxu1 }
 0xd5c   :  { %4526 = vmatmul.mubr.msk.bf16.vlgmr.msra.gmra.mrb[24].mxu0 %vm331_vm6, %v1829_v22 }
 0xd5d   :  { %4545 = vmatprep.mubr.msk.bf16.mxu0 %vm4849_vm5, %v4848_v9  ;;  %4538 = vmatpush3.bf16.msra.mxu0 %v4743_v61  ;;  %v4187_v61 = vld [vmem:[%s5607_s16] ss:$0 sm:$0xff] }
 0xd5e   :  { %4539 = vmatprep.subr.bf16.mxu0 %v4848_v9 }
 0xd61   :  { %4540 = vmatpush3.bf16.msra.mxu0 %v4744_v0 }
 0xd62   :  { %4541 = vmatprep.subr.bf16.mxu0 %v4848_v9 }
 0xd65   :  { %4542 = vmatpush3.bf16.msra.mxu0 %v4745_v1 }
 0xd66   :  { %4543 = vmatprep.subr.bf16.mxu0 %v4848_v9 }
 0xe2f   :  { %v1870_v25 = vpop.f32.mrb[24].mxu0 }
 0xe30   :  { %v1877_v26 = vadd.f32 %v1870_v25, %v1493_v3  ;;  %v4527_v28 = vpop.f32.mrb[25].mxu0  ;;  %v4746_v3 = vld [vmem:[%s5604_s14 + $0x18] sm:$0xff]  }
 0xe31   :  { %v1873_v29 = vpop.f32.mrb[26].mxu0  ;;  %4544 = vmatpush3.bf16.msra.mxu0 %v4746_v3 }
 0xe32   :  { %v1878_v30 = vadd.f32 %v1873_v29, %v1494_v5  ;;  %v4528_v32 = vpop.f32.mrb[27].mxu0  ;;  %v1879_v33 = vadd.f32 %v1877_v26, %v5045_v62  ;;  %4562 = vmatprep.subr.mxu0 %v4848_v9 }
 0xe34   :  { %v1883_v34 = vsel %vm184_vm4, %v1879_v33, 0.0  ;;  %v1880_v35 = vadd.f32 %v1878_v30, %v5047_v63  ;;  %v4741_v63 = vld [vmem:[%s5601_s12] sm:$0xff]  }
 0xe35   :  { %1884 = vadd.xlane.f32.xlu0 %v1883_v34  ;;  %4530 = vmatpush3.bf16.msra.mxu1 %v4741_v63 }
 0xe36   :  { %v1886_v23 = vsel %vm184_vm4, %v1880_v35, 0.0  ;;  %4531 = vmatprep.subr.bf16.mxu1 %v4848_v9 }
 0xe37   :  { %1887 = vadd.xlane.f32.xlu1 %v1886_v23 }
 0xe39   :  { %4532 = vmatpush3.bf16.msra.mxu1 %v4742_v45 }
 0xe3a   :  { %4549 = vmatprep.subr.bf16.mxu1 %v4848_v9 }
 0xec2   :  { %v1885_v36 = vpop.xlane.xlu0 %1884 }
 0xec3   :  { %v1889_v37 = vmul.f32 0.03125, %v1885_v36 }
 0xec4   :  { %v1888_v38 = vpop.xlane.xlu1 %1887 }
 0xec5   :  { %v1891_v39 = vsub.f32 %v1879_v33, %v1889_v37  ;;  %v1890_v40 = vmul.f32 0.03125, %v1888_v38 }
 0xec7   :  { %v1892_v41 = vsub.f32 %v1880_v35, %v1890_v40  ;;  %v1893_v42 = vmul.f32 %v1891_v39, %v1891_v39  ;;  %v4181_v35 = vld [vmem:[%s5606_s15] ss:$0 sm:$0xff] }
 0xec9   :  { %v1895_v43 = vsel %vm184_vm4, %v1893_v42, 0.0  ;;  %v1894_v44 = vmul.f32 %v1892_v41, %v1892_v41 }
 0xeca   :  { %1896 = vadd.xlane.f32.xlu0 %v1895_v43 }
 0xecb   :  { %v1898_v62 = vsel %vm184_vm4, %v1894_v44, 0.0 }
 0xece   :  { %1899 = vadd.xlane.f32.xlu0 %v1898_v62 }
 0xf57   :  { %v1897_v46 = vpop.xlane.xlu0 %1896 }
 0xf58   :  { %v1901_v47 = vmul.f32 0.03125, %v1897_v46 }
 0xf5a   :  { %v1903_v19 = vadd.f32 1e-12, %v1901_v47 }
 0xf5b   :  { %v1900_v21 = vpop.xlane.xlu0 %1899 }
 0xf5c   :  { %4791 = vrsqrt.f32 %v1903_v19  ;;  %v1902_v48 = vmul.f32 0.03125, %v1900_v21 }
 0xf5e   :  { %v1904_v49 = vadd.f32 1e-12, %v1902_v48 }
 0xf60   :  { %4793 = vrsqrt.f32 %v1904_v49 }
 0xf66   :  { %v4792_v50 = vpop.eup %4791 }
 0xf67   :  { %v1907_v51 = vmul.f32 %v4792_v50, %v1891_v39 }
 0xf69   :  { %v1915_v54 = vmul.f32 %v4175_v52, %v1907_v51  ;;  %v4747_v51 = vld [vmem:[%s5627_s27 + $0x10] sm:$0xff]  }
 0xf6a   :  { %v4794_v53 = vpop.eup %4793 }
 0xf6b   :  { %v1908_v55 = vmul.f32 %v4794_v53, %v1892_v41  ;;  %v1923_v58 = vadd.f32 %v4176_v56, %v1915_v54 }
 0xf6d   :  { %v1916_v57 = vmul.f32 %v4175_v52, %v1908_v55  ;;  %v4748_v52 = vld [vmem:[%s5627_s27 + $0x18] sm:$0xff]  }
 0xf6f   :  { %v1924_v59 = vadd.f32 %v4176_v56, %v1916_v57 }
 0xf71   :  { %v1925_v60 = vpack.c.bf16 %v1924_v59, %v1923_v58 }
 0xf73   :  { %4534 = vmatmul.mubr.msk.bf16.vlgmr.msra.gmra.mrb[28].mxu1 %vm184_vm4, %v1925_v60 }
 0xf74   :  { %4553 = vmatprep.mubr.msk.bf16.mxu1 %vm4849_vm5, %v4848_v9  ;;  %4550 = vmatpush3.bf16.msra.mxu1 %v4747_v51 }
 0xf75   :  { %4551 = vmatprep.subr.bf16.mxu1 %v4848_v9 }
 0xf78   :  { %4552 = vmatpush3.bf16.msra.mxu1 %v4748_v52 }
 0xf79   :  { %4557 = vmatprep.subr.mxu1 %v4848_v9 }
0x1046   :  { %v1986_v4 = vpop.f32.mrb[28].mxu1 }
0x1047   :  { %v1987_v5 = vadd.f32 %v4177_v2, %v1986_v4  ;;  %v4535_v6 = vpop.f32.mrb[29].mxu1 }
0x1048   :  { %v1989_v8 = vpop.f32.mrb[30].mxu1 }
0x1049   :  { %v1993_v10 = vmul.f32 %v1987_v5, %v1987_v5  ;;  %v1990_v11 = vadd.f32 %v4177_v2, %v1989_v8  ;;  %v4536_v12 = vpop.f32.mrb[31].mxu1  ;;  %v4188_v2 = vld [vmem:[%s5608_s17] ss:$0 sm:$0xff] }
0x104a   :  { %v4194_v12 = vld [vmem:[%s5597_s7 + $0x1] ss:$0 sm:$0xff]  ;;  %s5629_s7 = smov 104  }
0x104b   :  { %v1995_v13 = vmul.f32 %v1993_v10, %v1987_v5  ;;  %v1994_v14 = vmul.f32 %v1990_v11, %v1990_v11 }
0x104d   :  { %v1997_v7 = vmul.f32 0.044715, %v1995_v13  ;;  %v1996_v15 = vmul.f32 %v1994_v14, %v1990_v11 }
0x104f   :  { %v1999_v16 = vadd.f32 %v1997_v7, %v1987_v5  ;;  %v1998_v17 = vmul.f32 0.044715, %v1996_v15 }
0x1051   :  { %v2001_v18 = vmul.f32 0.7978846, %v1999_v16  ;;  %v2000_v20 = vadd.f32 %v1998_v17, %v1990_v11 }
0x1053   :  { %4795 = vtanh.f32 %v2001_v18  ;;  %v2002_v22 = vmul.f32 0.7978846, %v2000_v20 }
0x1055   :  { %4797 = vtanh.f32 %v2002_v22 }
0x105d   :  { %v4796_v24 = vpop.eup %4795 }
0x105e   :  { %v2005_v25 = vadd.f32 1.0, %v4796_v24 }
0x105f   :  { %v4798_v26 = vpop.eup %4797 }
0x1060   :  { %v2007_v28 = vmul.f32 0.5, %v2005_v25  ;;  %v2006_v29 = vadd.f32 1.0, %v4798_v26 }
0x1062   :  { %v2008_v30 = vmul.f32 0.5, %v2006_v29  ;;  %v2009_v32 = vmul.f32 %v2007_v28, %v1987_v5 }
0x1064   :  { %v2010_v33 = vmul.f32 %v2008_v30, %v1990_v11 }
0x1066   :  { %v2011_v34 = vpack.c.bf16 %v2010_v33, %v2009_v32 }
0x1068   :  { %4546 = vmatmul.mubr.msk.bf16.vlgmr.msra.gmra.mrb[28].mxu0 %vm2051_vm7, %v2011_v34 }
0x1069   :  { %4564 = vmatprep.mubr.msk.f32.mxu0 %vm4849_vm5, %v4848_v9 }
0x113b   :  { %v2089_v23 = vpop.f32.mrb[28].mxu0 }
0x113c   :  { %v2090_v36 = vadd.f32 %v4181_v35, %v2089_v23  ;;  %v4547_v37 = vpop.f32.mrb[29].mxu0 }
0x113d   :  { %v2092_v38 = vpop.f32.mrb[30].mxu0 }
0x113e   :  { %v2093_v39 = vadd.f32 %v4181_v35, %v2092_v38  ;;  %v4548_v40 = vpop.f32.mrb[31].mxu0  ;;  %v2096_v41 = vadd.f32 %v2090_v36, %v1923_v58 }
0x1140   :  { %v2100_v42 = vsel %vm184_vm4, %v2096_v41, 0.0  ;;  %v2097_v43 = vadd.f32 %v2093_v39, %v1924_v59 }
0x1141   :  { %2101 = vadd.xlane.f32.xlu0 %v2100_v42 }
0x1142   :  { %v2103_v44 = vsel %vm184_vm4, %v2097_v43, 0.0 }
0x1145   :  { %2104 = vadd.xlane.f32.xlu0 %v2103_v44 }
0x11ce   :  { %v2102_v62 = vpop.xlane.xlu0 %2101 }
0x11cf   :  { %v2106_v63 = vmul.f32 0.03125, %v2102_v62 }
0x11d1   :  { %v2108_v45 = vsub.f32 %v2096_v41, %v2106_v63 }
0x11d2   :  { %v2105_v46 = vpop.xlane.xlu0 %2104 }
0x11d3   :  { %v2107_v47 = vmul.f32 0.03125, %v2105_v46  ;;  %v2110_v19 = vmul.f32 %v2108_v45, %v2108_v45 }
0x11d5   :  { %v2109_v21 = vsub.f32 %v2097_v43, %v2107_v47  ;;  %v2112_v48 = vsel %vm184_vm4, %v2110_v19, 0.0 }
0x11d6   :  { %2113 = vadd.xlane.f32.xlu0 %v2112_v48 }
0x11d7   :  { %v2111_v49 = vmul.f32 %v2109_v21, %v2109_v21 }
0x11d9   :  { %v2115_v50 = vsel %vm184_vm4, %v2111_v49, 0.0 }
0x11da   :  { %2116 = vadd.xlane.f32.xlu1 %v2115_v50 }
0x1263   :  { %v2114_v53 = vpop.xlane.xlu0 %2113 }
0x1264   :  { %v2118_v54 = vmul.f32 0.03125, %v2114_v53 }
0x1266   :  { %v2120_v55 = vadd.f32 1e-12, %v2118_v54 }
0x1267   :  { %v2117_v56 = vpop.xlane.xlu1 %2116 }
0x1268   :  { %4799 = vrsqrt.f32 %v2120_v55  ;;  %v2119_v57 = vmul.f32 0.03125, %v2117_v56 }
0x126a   :  { %v2121_v58 = vadd.f32 1e-12, %v2119_v57 }
0x126c   :  { %4801 = vrsqrt.f32 %v2121_v58 }
0x1272   :  { %v4800_v59 = vpop.eup %4799 }
0x1273   :  { %v2124_v60 = vmul.f32 %v4800_v59, %v2108_v45 }
0x1275   :  { %v2132_v1 = vmul.f32 %v4187_v61, %v2124_v60 }
0x1276   :  { %v4802_v0 = vpop.eup %4801 }
0x1277   :  { %v2125_v3 = vmul.f32 %v4802_v0, %v2109_v21  ;;  %v5318_v5 = vadd.f32 %v4188_v2, %v2132_v1 }
0x1279   :  { %v2133_v4 = vmul.f32 %v4187_v61, %v2125_v3 }
0x127b   :  { %v5320_v6 = vadd.f32 %v4188_v2, %v2133_v4 }
0x127d   :  { %v2142_v8 = vpack.c.bf16 %v5320_v6, %v5318_v5 }
0x127f   :  { %4554 = vmatmul.mubr.msk.bf16.vlgmr.msra.gmra.mrb[32].mxu1 %vm184_vm4, %v2142_v8 }
0x1280   :  { %4559 = vmatprep.mubr.msk.f32.mxu1 %vm4849_vm5, %v4848_v9 }
0x1352   :  { %v2205_v10 = vpop.f32.mrb[32].mxu1 }
0x1353   :  { %v4555_v11 = vpop.f32.mrb[33].mxu1  ;;  %v5334_v15 = vadd.f32 %v4194_v12, %v2205_v10 }
0x1354   :  { %v2208_v13 = vpop.f32.mrb[34].mxu1 }
0x1355   :  { %v5330_v14 = vadd.f32 %v4194_v12, %v2208_v13  ;;  %v4556_v7 = vpop.f32.mrb[35].mxu1 }
0x1357   :  { %2297 = vrot.lane.b32.xlu0 %v5330_v14, %s4851_s25 }
0x135b   :  { %2609 = vrot.lane.b32.xlu0 %v5334_v15, %s4853_s1 }
0x135f   :  { %2607 = vrot.lane.b32.xlu0 %v5334_v15, %s4854_s6 }
0x1363   :  { %2685 = vrot.lane.b32.xlu0 %v5330_v14, %s4854_s6 }
0x13c9   :  { %v2298_v16 = vpop.permute.xlu0 %2297 }
0x13ca   :  { %4563 = vmatpush3.xpose.msk.msra.mxu0 %vm331_vm6, %v2298_v16 }
0x13cb   :  { %4572 = vmatprep.subr.mxu0 %v4848_v9 }
0x13cd   :  { %4565 = vmatmul.mubr.msk.f32.vlgmr.msra.gmra.mrb[22].mxu0 %vm331_vm6, %v5330_v14  ;;  %v2610_v23 = vpop.permute.xlu0 %2609 }
0x13ce   :  { %4574 = vmatprep.mubr.msk.f32.mxu0 %vm4849_vm5, %v4848_v9 }
0x13d1   :  { %v2608_v38 = vpop.permute.xlu0 %2607 }
0x13d5   :  { %v2686_v39 = vpop.permute.xlu0 %2685 }
0x14a0   :  { %v2369_v17 = vpop.f32.mrb[22].mxu0 }
0x14a1   :  { %v2374_v18 = vmul.f32 0.35355338, %v2369_v17  ;;  %v4566_v20 = vpop.f32.mrb[23].mxu0 }
0x14a3   :  { %v2376_v22 = vadd.f32 %v2374_v18, %v5086_v31 }
0x14a5   :  { %v2380_v24 = vsel %vm331_vm6, %v2376_v22, -inf }
0x14a6   :  { %2381 = vmax.xlane.f32.xlu1 %v2380_v24 }
0x14b7   :  { %2475 = vrot.lane.b32.xlu1 %v5330_v14, %s4850_s5 }
0x1533   :  { %v2382_v25 = vpop.xlane.xlu1 %2381 }
0x1534   :  { %v2384_v26 = vsub.f32 %v2376_v22, %v2382_v25 }
0x1536   :  { %v2387_v28 = vmul.f32 1.442695, %v2384_v26 }
0x1537   :  { %v2476_v29 = vpop.permute.xlu1 %2475 }
0x1538   :  { %4803 = vpow2.f32 %v2387_v28  ;;  %4573 = vmatpush3.msra.mxu0 %v2476_v29 }
0x1539   :  { %4583 = vmatprep.subr.mxu0 %v4848_v9 }
0x1542   :  { %v4804_v30 = vpop.eup %4803 }
0x1543   :  { %v2392_v32 = vsel %vm331_vm6, %v4804_v30, 0.0 }
0x1544   :  { %2393 = vadd.xlane.f32.xlu1 %v2392_v32 }
0x1555   :  { %2687 = vrot.lane.b32.xlu1 %v5330_v14, %s4853_s1 }
0x1559   :  { %2220 = vrot.lane.b32.xlu1 %v5334_v15, %s4851_s25 }
0x155d   :  { %2993 = vrot.lane.b32.xlu1 %v5334_v15, %s4855_s4 }
0x15d1   :  { %v2394_v33 = vpop.xlane.xlu1 %2393 }
0x15d2   :  { %4805 = vrcp.f32 %v2394_v33 }
0x15d5   :  { %v2688_v34 = vpop.permute.xlu1 %2687 }
0x15d9   :  { %v2221_v35 = vpop.permute.xlu1 %2220 }
0x15da   :  { %4558 = vmatpush3.xpose.msk.msra.mxu1 %vm331_vm6, %v2221_v35 }
0x15db   :  { %4567 = vmatprep.subr.mxu1 %v4848_v9 }
0x15dc   :  { %v4806_v36 = vpop.eup %4805 }
0x15dd   :  { %v2398_v37 = vmul.f32 %v4806_v36, %v4804_v30  ;;  %4560 = vmatmul.mubr.msk.f32.vlgmr.msra.gmra.mrb[36].mxu1 %vm331_vm6, %v5334_v15  ;;  %v2994_v59 = vpop.permute.xlu1 %2993  ;;  %v4198_v36 = vld [vmem:[%s5599_s8 + $0x10] sm:$0xf] }
0x15de   :  { %4569 = vmatprep.mubr.msk.f32.mxu1 %vm4849_vm5, %v4848_v9 }
0x15df   :  { %4575 = vmatmul.mubr.msk.f32.vlgmr.msra.gmra.mrb[32].mxu0 %vm331_vm6, %v2398_v37  ;;  %v2556_v37 = vsel %vm103_vm0, %v4198_v36, 0  ;;  %v4210_v36 = vld [vmem:[%s5600_s9 + $0x1] ss:$0 sm:$0xff] }
0x15e0   :  { %4584 = vmatpush3.xpose.msk.msra.mxu0 %vm331_vm6, %v2610_v23  ;;  %4585 = vmatprep.mubr.msk.f32.mxu0 %vm4849_vm5, %v4848_v9 }
0x15e1   :  { %4588 = vmatprep.subr.mxu0 %v4848_v9 }
0x15e3   :  { %4586 = vmatmul.mubr.msk.f32.vlgmr.msra.gmra.mrb[34].mxu0 %vm331_vm6, %v2608_v38 }
0x15e4   :  { %4589 = vmatpush3.xpose.msk.msra.mxu0 %vm331_vm6, %v2688_v34  ;;  %4590 = vmatprep.mubr.msk.f32.mxu0 %vm4849_vm5, %v4848_v9 }
0x15e5   :  { %4598 = vmatprep.subr.mxu0 %v4848_v9 }
0x15e7   :  { %4591 = vmatmul.mubr.msk.f32.vlgmr.msra.gmra.mrb[36].mxu0 %vm331_vm6, %v2686_v39 }
0x15e8   :  { %4600 = vmatprep.mubr.msk.f32.mxu0 %vm4849_vm5, %v4848_v9 }
0x16b0   :  { %v2292_v40 = vpop.f32.mrb[36].mxu1 }
0x16b1   :  { %v4561_v41 = vpop.f32.mrb[37].mxu1  ;;  %v2373_v53 = vmul.f32 0.35355338, %v2292_v40 }
0x16b2   :  { %v5379_v42 = vpop.f32.mrb[32].mxu0 }
0x16b3   :  { %v4576_v43 = vpop.f32.mrb[33].mxu0  ;;  %v2375_v55 = vadd.f32 %v2373_v53, %v5084_v27 }
0x16b5   :  { %v2377_v56 = vsel %vm331_vm6, %v2375_v55, -inf }
0x16b6   :  { %v2681_v44 = vpop.f32.mrb[34].mxu0 }
0x16b7   :  { %v4587_v62 = vpop.f32.mrb[35].mxu0  ;;  %v2763_v54 = vmul.f32 0.35355338, %v2681_v44 }
0x16b9   :  { %v2765_v57 = vadd.f32 %v2763_v54, %v5084_v27 }
0x16ba   :  { %v2759_v63 = vpop.f32.mrb[36].mxu0 }
0x16bb   :  { %v2764_v45 = vmul.f32 0.35355338, %v2759_v63  ;;  %v4592_v46 = vpop.f32.mrb[37].mxu0  ;;  %v2767_v58 = vsel %vm331_vm6, %v2765_v57, -inf }
0x16bd   :  { %v2766_v47 = vadd.f32 %v2764_v45, %v5086_v31 }
0x16bf   :  { %v2770_v19 = vsel %vm331_vm6, %v2766_v47, -inf }
0x16c0   :  { %2771 = vmax.xlane.f32.xlu0 %v2770_v19 }
0x16d6   :  { %2865 = vrot.lane.b32.xlu0 %v5330_v14, %s4857_s30 }
0x16da   :  { %2991 = vrot.lane.b32.xlu0 %v5334_v15, %s4856_s29 }
0x16de   :  { %3069 = vrot.lane.b32.xlu0 %v5330_v14, %s4856_s29 }
0x174d   :  { %v2772_v21 = vpop.xlane.xlu0 %2771 }
0x174e   :  { %v2774_v48 = vsub.f32 %v2766_v47, %v2772_v21 }
0x1750   :  { %v2777_v49 = vmul.f32 1.442695, %v2774_v48 }
0x1751   :  { %v2866_v50 = vpop.permute.xlu0 %2865 }
0x1752   :  { %4807 = vpow2.f32 %v2777_v49  ;;  %4599 = vmatpush3.msra.mxu0 %v2866_v50 }
0x1753   :  { %4609 = vmatprep.subr.mxu0 %v4848_v9 }
0x1755   :  { %v2992_v1 = vpop.permute.xlu0 %2991 }
0x1759   :  { %v3070_v2 = vpop.permute.xlu0 %3069 }
0x175c   :  { %v4808_v51 = vpop.eup %4807 }
0x175d   :  { %v2782_v52 = vsel %vm331_vm6, %v4808_v51, 0.0 }
0x175e   :  { %2783 = vadd.xlane.f32.xlu1 %v2782_v52 }
0x176f   :  { %3071 = vrot.lane.b32.xlu1 %v5330_v14, %s4855_s4 }
0x1793   :  { %2378 = vmax.xlane.f32.xlu1 %v2377_v56 }
0x1797   :  { %2768 = vmax.xlane.f32.xlu1 %v2767_v58 }
0x17eb   :  { %v2784_v60 = vpop.xlane.xlu1 %2783 }
0x17ec   :  { %4809 = vrcp.f32 %v2784_v60 }
0x17ef   :  { %v3072_v3 = vpop.permute.xlu1 %3071 }
0x17f6   :  { %v4810_v61 = vpop.eup %4809 }
0x17f7   :  { %v2788_v0 = vmul.f32 %v4810_v61, %v4808_v51 }
0x17f9   :  { %4601 = vmatmul.mubr.msk.f32.vlgmr.msra.gmra.mrb[38].mxu0 %vm331_vm6, %v2788_v0 }
0x17fa   :  { %4610 = vmatpush3.xpose.msk.msra.mxu0 %vm331_vm6, %v2994_v59  ;;  %4611 = vmatprep.mubr.msk.f32.mxu0 %vm4849_vm5, %v4848_v9  ;;  %v4199_v59 = vld [vmem:[%s5599_s8 + $0x14] sm:$0xf] }
0x17fb   :  { %4614 = vmatprep.subr.mxu0 %v4848_v9  ;;  %v2946_v60 = vsel %vm103_vm0, %v4199_v59, 0 }
0x17fd   :  { %4612 = vmatmul.mubr.msk.f32.vlgmr.msra.gmra.mrb[40].mxu0 %vm331_vm6, %v2992_v1 }
0x17fe   :  { %4615 = vmatpush3.xpose.msk.msra.mxu0 %vm331_vm6, %v3072_v3  ;;  %4616 = vmatprep.mubr.msk.f32.mxu0 %vm4849_vm5, %v4848_v9 }
0x17ff   :  { %4624 = vmatprep.subr.mxu0 %v4848_v9 }
0x1801   :  { %4617 = vmatmul.mubr.msk.f32.vlgmr.msra.gmra.mrb[42].mxu0 %vm331_vm6, %v3070_v2 }
0x1802   :  { %4626 = vmatprep.mubr.msk.f32.mxu0 %vm4849_vm5, %v4848_v9 }
0x1820   :  { %v2379_v4 = vpop.xlane.xlu1 %2378 }
0x1821   :  { %v2383_v8 = vsub.f32 %v2375_v55, %v2379_v4 }
0x1823   :  { %v2385_v10 = vmul.f32 1.442695, %v2383_v8 }
0x1824   :  { %v2769_v16 = vpop.xlane.xlu1 %2768 }
0x1825   :  { %4811 = vpow2.f32 %v2385_v10  ;;  %v2773_v17 = vsub.f32 %v2765_v57, %v2769_v16 }
0x1827   :  { %v2775_v22 = vmul.f32 1.442695, %v2773_v17 }
0x182f   :  { %v4812_v11 = vpop.eup %4811 }
0x1830   :  { %v2389_v12 = vsel %vm331_vm6, %v4812_v11, 0.0 }
0x1831   :  { %2390 = vadd.xlane.f32.xlu0 %v2389_v12 }
0x1847   :  { %2399 = vrot.lane.b32.xlu0 %v5334_v15, %s4850_s5 }
0x18be   :  { %v2391_v13 = vpop.xlane.xlu0 %2390 }
0x18bf   :  { %4813 = vrcp.f32 %v2391_v13 }
0x18c0   :  { %4815 = vpow2.f32 %v2775_v22 }
0x18c2   :  { %v2400_v7 = vpop.permute.xlu0 %2399 }
0x18c3   :  { %4568 = vmatpush3.msra.mxu1 %v2400_v7 }
0x18c4   :  { %4577 = vmatprep.subr.bf16.mxu1 %v4848_v9 }
0x18c9   :  { %v4814_v18 = vpop.eup %4813 }
0x18ca   :  { %v2397_v20 = vmul.f32 %v4814_v18, %v4812_v11  ;;  %v4816_v35 = vpop.eup %4815  ;;  %v4200_v18 = vld [vmem:[%s5599_s8 + $0x18] sm:$0xf] }
0x18cb   :  { %v2779_v23 = vsel %vm331_vm6, %v4816_v35, 0.0 }
0x18cc   :  { %4570 = vmatmul.mubr.msk.f32.vlgmr.msra.gmra.mrb[38].mxu1 %vm331_vm6, %v2397_v20  ;;  %v5415_v24 = vpop.f32.mrb[38].mxu0  ;;  %v3330_v20 = vsel %vm103_vm0, %v4200_v18, 0 }
0x18cd   :  { %v4602_v25 = vpop.f32.mrb[39].mxu0  ;;  %4579 = vmatprep.mubr.msk.bf16.mxu1 %vm4849_vm5, %v4848_v9  ;;  %4578 = vmatpush3.bf16.msra.mxu1 %v2556_v37 }
0x18ce   :  { %4593 = vmatprep.subr.mxu1 %v4848_v9 }
0x18d0   :  { %v3065_v26 = vpop.f32.mrb[40].mxu0 }
0x18d1   :  { %v4613_v28 = vpop.f32.mrb[41].mxu0  ;;  %v3147_v38 = vmul.f32 0.35355338, %v3065_v26 }
0x18d3   :  { %v3149_v39 = vadd.f32 %v3147_v38, %v5084_v27 }
0x18d4   :  { %v3143_v29 = vpop.f32.mrb[42].mxu0 }
0x18d5   :  { %v3148_v30 = vmul.f32 0.35355338, %v3143_v29  ;;  %v4618_v32 = vpop.f32.mrb[43].mxu0  ;;  %v3151_v40 = vsel %vm331_vm6, %v3149_v39, -inf }
0x18d7   :  { %v3150_v33 = vadd.f32 %v3148_v30, %v5086_v31 }
0x18d9   :  { %v3154_v34 = vsel %vm331_vm6, %v3150_v33, -inf }
0x18da   :  { %3155 = vmax.xlane.f32.xlu1 %v3154_v34 }
0x18de   :  { %2780 = vadd.xlane.f32.xlu1 %v2779_v23 }
0x18ef   :  { %2789 = vrot.lane.b32.xlu1 %v5334_v15, %s4857_s30  ;;  %s5630_s30 = smov 40  }
0x18f3   :  { %3249 = vrot.lane.b32.xlu1 %v5330_v14, %s4859_s21 }
0x18f7   :  { %3377 = vrot.lane.b32.xlu1 %v5334_v15, %s4858_s0 }
0x18fb   :  { %3375 = vrot.lane.b32.xlu1 %v5334_v15, %s5629_s7 }
0x18ff   :  { %3455 = vrot.lane.b32.xlu1 %v5330_v14, %s4858_s0 }
0x1903   :  { %3453 = vrot.lane.b32.xlu1 %v5330_v14, %s5629_s7 }
0x1927   :  { %3152 = vmax.xlane.f32.xlu1 %v3151_v40 }
0x1967   :  { %v3156_v41 = vpop.xlane.xlu1 %3155 }
0x1968   :  { %v3158_v43 = vsub.f32 %v3150_v33, %v3156_v41 }
0x196a   :  { %v3161_v44 = vmul.f32 1.442695, %v3158_v43 }
0x196b   :  { %v2781_v62 = vpop.xlane.xlu1 %2780 }
0x196c   :  { %4817 = vpow2.f32 %v3161_v44 }
0x196d   :  { %4819 = vrcp.f32 %v2781_v62 }
0x196f   :  { %v2790_v63 = vpop.permute.xlu1 %2789 }
0x1973   :  { %v3250_v45 = vpop.permute.xlu1 %3249 }
0x1974   :  { %4625 = vmatpush3.msra.mxu0 %v3250_v45 }
0x1975   :  { %4635 = vmatprep.subr.mxu0 %v4848_v9 }
0x1976   :  { %v4818_v46 = vpop.eup %4817 }
0x1977   :  { %v3166_v47 = vsel %vm331_vm6, %v4818_v46, 0.0  ;;  %v3378_v19 = vpop.permute.xlu1 %3377  ;;  %v4820_v51 = vpop.eup %4819 }
0x1978   :  { %3167 = vadd.xlane.f32.xlu0 %v3166_v47  ;;  %v2787_v52 = vmul.f32 %v4820_v51, %v4816_v35 }
0x197b   :  { %v3376_v50 = vpop.permute.xlu1 %3375 }
0x197f   :  { %v3456_v53 = vpop.permute.xlu1 %3455 }
0x1983   :  { %v3454_v54 = vpop.permute.xlu1 %3453 }
0x199f   :  { %v2471_v21 = vpop.f32.mrb[38].mxu1 }
0x19a0   :  { %v2551_v48 = vpack.c.bf16 %v5379_v42, %v2471_v21  ;;  %v4571_v49 = vpop.f32.mrb[39].mxu1 }
0x19a2   :  { %4580 = vmatmul.mubr.msk.bf16.vlgmr.msra.gmra.mrb[40].mxu1 %vm331_vm6, %v2551_v48 }
0x19a3   :  { %4594 = vmatpush3.msra.mxu1 %v2790_v63  ;;  %4595 = vmatprep.mubr.msk.f32.mxu1 %vm4849_vm5, %v4848_v9 }
0x19a4   :  { %4603 = vmatprep.subr.bf16.mxu1 %v4848_v9 }
0x19aa   :  { %4596 = vmatmul.mubr.msk.f32.vlgmr.msra.gmra.mrb[44].mxu1 %vm331_vm6, %v2787_v52 }
0x19ab   :  { %4605 = vmatprep.mubr.msk.bf16.mxu1 %vm4849_vm5, %v4848_v9  ;;  %4604 = vmatpush3.bf16.msra.mxu1 %v2946_v60 }
0x19ac   :  { %4619 = vmatprep.subr.mxu1 %v4848_v9 }
0x19b4   :  { %v3153_v42 = vpop.xlane.xlu1 %3152 }
0x19b5   :  { %v3157_v55 = vsub.f32 %v3149_v39, %v3153_v42 }
0x19b7   :  { %v3159_v56 = vmul.f32 1.442695, %v3157_v55 }
0x19b9   :  { %4821 = vpow2.f32 %v3159_v56 }
0x19c3   :  { %v4822_v57 = vpop.eup %4821 }
0x19c4   :  { %v3163_v58 = vsel %vm331_vm6, %v4822_v57, 0.0 }
0x19c5   :  { %3164 = vadd.xlane.f32.xlu0 %v3163_v58 }
0x19db   :  { %3173 = vrot.lane.b32.xlu0 %v5334_v15, %s4859_s21 }
0x1a05   :  { %v3168_v61 = vpop.xlane.xlu0 %3167 }
0x1a06   :  { %4823 = vrcp.f32 %v3168_v61 }
0x1a10   :  { %v4824_v0 = vpop.eup %4823 }
0x1a11   :  { %v3172_v1 = vmul.f32 %v4824_v0, %v4818_v46 }
0x1a13   :  { %4627 = vmatmul.mubr.msk.f32.vlgmr.msra.gmra.mrb[44].mxu0 %vm331_vm6, %v3172_v1 }
0x1a14   :  { %4636 = vmatpush3.xpose.msk.msra.mxu0 %vm331_vm6, %v3378_v19  ;;  %4637 = vmatprep.mubr.msk.f32.mxu0 %vm4849_vm5, %v4848_v9 }
0x1a15   :  { %4640 = vmatprep.subr.mxu0 %v4848_v9 }
0x1a17   :  { %4638 = vmatmul.mubr.msk.f32.vlgmr.msra.gmra.mrb[46].mxu0 %vm331_vm6, %v3376_v50 }
0x1a18   :  { %4641 = vmatpush3.xpose.msk.msra.mxu0 %vm331_vm6, %v3456_v53  ;;  %4642 = vmatprep.mubr.msk.f32.mxu0 %vm4849_vm5, %v4848_v9 }
0x1a19   :  { %4650 = vmatprep.subr.mxu0 %v4848_v9 }
0x1a1b   :  { %4643 = vmatmul.mubr.msk.f32.vlgmr.msra.gmra.mrb[48].mxu0 %vm331_vm6, %v3454_v54 }
0x1a1c   :  { %4652 = vmatprep.mubr.msk.f32.mxu0 %vm4849_vm5, %v4848_v9 }
0x1a52   :  { %v3165_v2 = vpop.xlane.xlu0 %3164 }
0x1a53   :  { %4825 = vrcp.f32 %v3165_v2 }
0x1a56   :  { %v3174_v7 = vpop.permute.xlu0 %3173 }
0x1a5d   :  { %v4826_v16 = vpop.eup %4825 }
0x1a5e   :  { %v3171_v17 = vmul.f32 %v4826_v16, %v4822_v57 }
0x1a75   :  { %v2592_v3 = vpop.f32.mrb[40].mxu1 }
0x1a76   :  { %v4581_v4 = vpop.f32.mrb[41].mxu1  ;;  %v2605_v37 = vadd.f32 %v4210_v36, %v2592_v3  ;;  %v4201_v3 = vld [vmem:[%s5599_s8 + $0x1c] sm:$0xf] }
0x1a77   :  { %v2595_v8 = vpop.f32.mrb[42].mxu1  ;;  %v3714_v2 = vsel %vm103_vm0, %v4201_v3, 0 }
0x1a78   :  { %v4582_v10 = vpop.f32.mrb[43].mxu1  ;;  %v2606_v38 = vadd.f32 %v4210_v36, %v2595_v8 }
0x1a7d   :  { %v2861_v11 = vpop.f32.mrb[44].mxu1 }
0x1a7e   :  { %v2941_v12 = vpack.c.bf16 %v5415_v24, %v2861_v11  ;;  %v4597_v13 = vpop.f32.mrb[45].mxu1 }
0x1a80   :  { %4606 = vmatmul.mubr.msk.bf16.vlgmr.msra.gmra.mrb[48].mxu1 %vm331_vm6, %v2941_v12 }
0x1a81   :  { %4620 = vmatpush3.msra.mxu1 %v3174_v7  ;;  %4621 = vmatprep.mubr.msk.f32.mxu1 %vm4849_vm5, %v4848_v9 }
0x1a82   :  { %4629 = vmatprep.subr.bf16.mxu1 %v4848_v9 }
0x1a88   :  { %4622 = vmatmul.mubr.msk.f32.vlgmr.msra.gmra.mrb[46].mxu1 %vm331_vm6, %v3171_v17 }
0x1a89   :  { %4631 = vmatprep.mubr.msk.bf16.mxu1 %vm4849_vm5, %v4848_v9  ;;  %4630 = vmatpush3.bf16.msra.mxu1 %v3330_v20 }
0x1a8a   :  { %4645 = vmatprep.subr.mxu1 %v4848_v9 }
0x1ae6   :  { %v3321_v22 = vpop.f32.mrb[44].mxu0 }
0x1ae7   :  { %v4628_v24 = vpop.f32.mrb[45].mxu0 }
0x1aea   :  { %v3449_v25 = vpop.f32.mrb[46].mxu0 }
0x1aeb   :  { %v3531_v26 = vmul.f32 0.35355338, %v3449_v25  ;;  %v4639_v28 = vpop.f32.mrb[47].mxu0 }
0x1aed   :  { %v3533_v29 = vadd.f32 %v3531_v26, %v5084_v27 }
0x1aee   :  { %v3527_v30 = vpop.f32.mrb[48].mxu0 }
0x1aef   :  { %v3532_v32 = vmul.f32 0.35355338, %v3527_v30  ;;  %v4644_v33 = vpop.f32.mrb[49].mxu0  ;;  %v3535_v34 = vsel %vm331_vm6, %v3533_v29, -inf }
0x1af0   :  { %3536 = vmax.xlane.f32.xlu0 %v3535_v34 }
0x1af1   :  { %v3534_v35 = vadd.f32 %v3532_v32, %v5086_v31 }
0x1af3   :  { %v3538_v23 = vsel %vm331_vm6, %v3534_v35, -inf }
0x1af4   :  { %3539 = vmax.xlane.f32.xlu1 %v3538_v23 }
0x1b06   :  { %3633 = vrot.lane.b32.xlu0 %v5330_v14, %s5630_s30 }
0x1b53   :  { %v2982_v27 = vpop.f32.mrb[48].mxu1 }
0x1b54   :  { %v2989_v39 = vadd.f32 %v2982_v27, %v2605_v37  ;;  %v4607_v40 = vpop.f32.mrb[49].mxu1  ;;  %v4750_v37 = vld [vmem:[%s5601_s12 + $0x18] sm:$0xff]  }
0x1b55   :  { %v2985_v41 = vpop.f32.mrb[50].mxu1 }
0x1b56   :  { %v2990_v43 = vadd.f32 %v2985_v41, %v2606_v38  ;;  %v4608_v44 = vpop.f32.mrb[51].mxu1 }
0x1b5b   :  { %v3245_v62 = vpop.f32.mrb[46].mxu1 }
0x1b5c   :  { %v3325_v31 = vpack.c.bf16 %v3321_v22, %v3245_v62  ;;  %v4623_v63 = vpop.f32.mrb[47].mxu1 }
0x1b5e   :  { %4632 = vmatmul.mubr.msk.bf16.vlgmr.msra.gmra.mrb[52].mxu1 %vm331_vm6, %v3325_v31  ;;  %v4234_v31 = vld [vmem:[%s5602_s10 + $0x1] ss:$0 sm:$0xff] }
0x1b5f   :  { %4647 = vmatprep.mubr.msk.f32.mxu1 %vm4849_vm5, %v4848_v9 }
0x1b7d   :  { %v3537_v14 = vpop.xlane.xlu0 %3536 }
0x1b7e   :  { %v3541_v45 = vsub.f32 %v3533_v29, %v3537_v14 }
0x1b80   :  { %v3543_v46 = vmul.f32 1.442695, %v3541_v45 }
0x1b81   :  { %v3634_v47 = vpop.permute.xlu0 %3633  ;;  %v3540_v19 = vpop.xlane.xlu1 %3539 }
0x1b82   :  { %4827 = vpow2.f32 %v3543_v46  ;;  %v3542_v21 = vsub.f32 %v3534_v35, %v3540_v19  ;;  %4651 = vmatpush3.msra.mxu0 %v3634_v47  ;;  %v4235_v46 = vld [vmem:[%s5603_s11 + $0x1] ss:$0 sm:$0xff] }
0x1b83   :  { %4661 = vmatprep.subr.bf16.mxu0 %v4848_v9 }
0x1b84   :  { %v3545_v48 = vmul.f32 1.442695, %v3542_v21 }
0x1b86   :  { %4829 = vpow2.f32 %v3545_v48 }
0x1b8c   :  { %v4828_v49 = vpop.eup %4827 }
0x1b8d   :  { %v3547_v50 = vsel %vm331_vm6, %v4828_v49, 0.0 }
0x1b8e   :  { %3548 = vadd.xlane.f32.xlu1 %v3547_v50  ;;  %v4752_v50 = vld [vmem:[%s5604_s14 + $0x28] sm:$0xff]  }
0x1b90   :  { %v4830_v51 = vpop.eup %4829 }
0x1b91   :  { %v3550_v52 = vsel %vm331_vm6, %v4830_v51, 0.0 }
0x1b92   :  { %3551 = vadd.xlane.f32.xlu1 %v3550_v52  ;;  %v4754_v52 = vld [vmem:[%s5604_s14 + $0x38] sm:$0xff]  }
0x1ba3   :  { %3557 = vrot.lane.b32.xlu1 %v5334_v15, %s5630_s30 }
0x1c1b   :  { %v3549_v53 = vpop.xlane.xlu1 %3548 }
0x1c1c   :  { %4831 = vrcp.f32 %v3549_v53  ;;  %v4241_v53 = vld [vmem:[%s5605_s13 + $0x1] ss:$0 sm:$0xff] }
0x1c1f   :  { %v3552_v54 = vpop.xlane.xlu1 %3551 }
0x1c20   :  { %4833 = vrcp.f32 %v3552_v54 }
0x1c23   :  { %v3558_v42 = vpop.permute.xlu1 %3557 }
0x1c24   :  { %4646 = vmatpush3.msra.mxu1 %v3558_v42 }
0x1c25   :  { %4655 = vmatprep.subr.bf16.mxu1 %v4848_v9 }
0x1c26   :  { %v4832_v55 = vpop.eup %4831 }
0x1c27   :  { %v3555_v56 = vmul.f32 %v4832_v55, %v4828_v49  ;;  %v4751_v49 = vld [vmem:[%s5604_s14 + $0x20] sm:$0xff]  }
0x1c29   :  { %4648 = vmatmul.mubr.msk.f32.vlgmr.msra.gmra.mrb[56].mxu1 %vm331_vm6, %v3555_v56 }
0x1c2a   :  { %v4834_v57 = vpop.eup %4833  ;;  %4657 = vmatprep.mubr.msk.bf16.mxu1 %vm4849_vm5, %v4848_v9  ;;  %4656 = vmatpush3.bf16.msra.mxu1 %v3714_v2 }
0x1c2b   :  { %v3556_v58 = vmul.f32 %v4834_v57, %v4830_v51  ;;  %4669 = vmatprep.subr.bf16.mxu1 %v4848_v9  ;;  %v4753_v51 = vld [vmem:[%s5604_s14 + $0x30] sm:$0xff]  }
0x1c2d   :  { %4653 = vmatmul.mubr.msk.f32.vlgmr.msra.gmra.mrb[50].mxu0 %vm331_vm6, %v3556_v58 }
0x1c2e   :  { %4665 = vmatprep.mubr.msk.bf16.mxu0 %vm4849_vm5, %v4848_v9 }
0x1c31   :  { %v3366_v15 = vpop.f32.mrb[52].mxu1 }
0x1c32   :  { %v3373_v59 = vadd.f32 %v3366_v15, %v2989_v39  ;;  %v4633_v60 = vpop.f32.mrb[53].mxu1 }
0x1c33   :  { %v3369_v61 = vpop.f32.mrb[54].mxu1 }
0x1c34   :  { %v3374_v0 = vadd.f32 %v3369_v61, %v2990_v43  ;;  %v4634_v1 = vpop.f32.mrb[55].mxu1 }
0x1cfc   :  { %v3629_v4 = vpop.f32.mrb[56].mxu1 }
0x1cfd   :  { %v4649_v8 = vpop.f32.mrb[57].mxu1 }
0x1d00   :  { %v3705_v10 = vpop.f32.mrb[50].mxu0 }
0x1d01   :  { %v3709_v11 = vpack.c.bf16 %v3705_v10, %v3629_v4  ;;  %v4654_v12 = vpop.f32.mrb[51].mxu0 }
0x1d03   :  { %4658 = vmatmul.mubr.msk.bf16.vlgmr.msra.gmra.mrb[60].mxu1 %vm331_vm6, %v3709_v11 }
0x1d04   :  { %4677 = vmatprep.mubr.msk.bf16.mxu1 %vm4849_vm5, %v4848_v9  ;;  %4670 = vmatpush3.bf16.msra.mxu1 %v4751_v49 }
0x1d05   :  { %4671 = vmatprep.subr.bf16.mxu1 %v4848_v9 }
0x1d08   :  { %4672 = vmatpush3.bf16.msra.mxu1 %v4752_v50 }
0x1d09   :  { %4673 = vmatprep.subr.bf16.mxu1 %v4848_v9 }
0x1d0c   :  { %4674 = vmatpush3.bf16.msra.mxu1 %v4753_v51 }
0x1d0d   :  { %4675 = vmatprep.subr.bf16.mxu1 %v4848_v9 }
0x1d10   :  { %4676 = vmatpush3.bf16.msra.mxu1 %v4754_v52  ;;  %v4262_v52 = vld [vmem:[%s5607_s16 + $0x1] ss:$0 sm:$0xff] }
0x1dd6   :  { %v3750_v13 = vpop.f32.mrb[60].mxu1 }
0x1dd7   :  { %v3757_v7 = vadd.f32 %v3750_v13, %v3373_v59  ;;  %v4659_v16 = vpop.f32.mrb[61].mxu1 }
0x1dd8   :  { %v3753_v17 = vpop.f32.mrb[62].mxu1 }
0x1dd9   :  { %v3758_v18 = vadd.f32 %v3753_v17, %v3374_v0  ;;  %v4660_v20 = vpop.f32.mrb[63].mxu1  ;;  %v3759_v22 = vadd.f32 %v3757_v7, %v5318_v5 }
0x1dda   :  { %v4254_v20 = vld [vmem:[%s5606_s15 + $0x1] ss:$0 sm:$0xff] }
0x1ddb   :  { %v3765_v24 = vsel %vm184_vm4, %v3759_v22, 0.0  ;;  %v3760_v25 = vadd.f32 %v3758_v18, %v5320_v6  ;;  %v4749_v6 = vld [vmem:[%s5601_s12 + $0x10] sm:$0xff]  }
0x1ddc   :  { %3766 = vadd.xlane.f32.xlu1 %v3765_v24  ;;  %4662 = vmatpush3.bf16.msra.mxu0 %v4749_v6 }
0x1ddd   :  { %v3768_v26 = vsel %vm184_vm4, %v3760_v25, 0.0  ;;  %4663 = vmatprep.subr.bf16.mxu0 %v4848_v9 }
0x1dde   :  { %3769 = vadd.xlane.f32.xlu0 %v3768_v26 }
0x1de0   :  { %4664 = vmatpush3.bf16.msra.mxu0 %v4750_v37 }
0x1e69   :  { %v3767_v28 = vpop.xlane.xlu1 %3766 }
0x1e6a   :  { %v3771_v29 = vmul.f32 0.03125, %v3767_v28 }
0x1e6b   :  { %v3770_v30 = vpop.xlane.xlu0 %3769 }
0x1e6c   :  { %v3773_v32 = vsub.f32 %v3759_v22, %v3771_v29  ;;  %v3772_v33 = vmul.f32 0.03125, %v3770_v30 }
0x1e6e   :  { %v3774_v34 = vsub.f32 %v3760_v25, %v3772_v33  ;;  %v3775_v35 = vmul.f32 %v3773_v32, %v3773_v32 }
0x1e70   :  { %v3777_v23 = vsel %vm184_vm4, %v3775_v35, 0.0  ;;  %v3776_v36 = vmul.f32 %v3774_v34, %v3774_v34 }
0x1e71   :  { %3778 = vadd.xlane.f32.xlu1 %v3777_v23 }
0x1e72   :  { %v3780_v5 = vsel %vm184_vm4, %v3776_v36, 0.0 }
0x1e75   :  { %3781 = vadd.xlane.f32.xlu1 %v3780_v5 }
0x1efe   :  { %v3779_v27 = vpop.xlane.xlu1 %3778 }
0x1eff   :  { %v3783_v38 = vmul.f32 0.03125, %v3779_v27 }
0x1f01   :  { %v3785_v39 = vadd.f32 1e-12, %v3783_v38 }
0x1f02   :  { %v3782_v40 = vpop.xlane.xlu1 %3781 }
0x1f03   :  { %4835 = vrsqrt.f32 %v3785_v39  ;;  %v3784_v41 = vmul.f32 0.03125, %v3782_v40 }
0x1f05   :  { %v3786_v43 = vadd.f32 1e-12, %v3784_v41  ;;  %v4034_v41 = vld [vmem:[%s5609_s18] sm:$0xff] }
0x1f07   :  { %4837 = vrsqrt.f32 %v3786_v43  ;;  %v4035_v43 = vld [vmem:[%s5609_s18 + $0x8] sm:$0xff] }
0x1f0d   :  { %v4836_v44 = vpop.eup %4835 }
0x1f0e   :  { %v3789_v62 = vmul.f32 %v4836_v44, %v3773_v32  ;;  %v4036_v44 = vld [vmem:[%s5609_s18 + $0x10] sm:$0xff] }
0x1f10   :  { %v3797_v14 = vmul.f32 %v4234_v31, %v3789_v62  ;;  %v4862_v62 = vmov 0.0|0.0  }
0x1f11   :  { %v4838_v63 = vpop.eup %4837  ;;  %4716 = vmatprep.subr.bf16.mxu0 %v4862_v62 }
0x1f12   :  { %v3790_v45 = vmul.f32 %v4838_v63, %v3774_v34  ;;  %v3805_v19 = vadd.f32 %v4235_v46, %v3797_v14  ;;  %v4037_v63 = vld [vmem:[%s5609_s18 + $0x18] sm:$0xff] }
0x1f13   :  { %v4720_v14 = vpack.c.bf16 %v4037_v63, %v4036_v44 }
0x1f14   :  { %v3798_v47 = vmul.f32 %v4234_v31, %v3790_v45  ;;  %v4717_v31 = vpack.c.bf16 %v4035_v43, %v4034_v41 }
0x1f16   :  { %v3806_v21 = vadd.f32 %v4235_v46, %v3798_v47 }
0x1f18   :  { %v3807_v48 = vpack.c.bf16 %v3806_v21, %v3805_v19 }
0x1f1a   :  { %4666 = vmatmul.mubr.msk.bf16.vlgmr.msra.gmra.mrb[52].mxu0 %vm184_vm4, %v3807_v48 }
0x1f1b   :  { %4689 = vmatprep.mubr.msk.f32.mxu0 %vm4849_vm5, %v4848_v9  ;;  %4718 = vmatpush3.bf16.msra.mxu0 %v4717_v31 }
0x1f1c   :  { %4719 = vmatprep.subr.bf16.mxu0 %v4862_v62 }
0x1f1f   :  { %4721 = vmatpush3.bf16.msra.mxu0 %v4720_v14 }
0x1fed   :  { %v3870_v54 = vpop.f32.mrb[52].mxu0 }
0x1fee   :  { %v3871_v42 = vadd.f32 %v4241_v53, %v3870_v54  ;;  %v4667_v55 = vpop.f32.mrb[53].mxu0 }
0x1fef   :  { %v3873_v56 = vpop.f32.mrb[54].mxu0  ;;  %v4263_v55 = vld [vmem:[%s5608_s17 + $0x1] ss:$0 sm:$0xff] }
0x1ff0   :  { %v3877_v57 = vmul.f32 %v3871_v42, %v3871_v42  ;;  %v3874_v58 = vadd.f32 %v4241_v53, %v3873_v56  ;;  %v4668_v15 = vpop.f32.mrb[55].mxu0 }
0x1ff2   :  { %v3879_v59 = vmul.f32 %v3877_v57, %v3871_v42  ;;  %v3878_v60 = vmul.f32 %v3874_v58, %v3874_v58 }
0x1ff4   :  { %v3881_v61 = vmul.f32 0.044715, %v3879_v59  ;;  %v3880_v9 = vmul.f32 %v3878_v60, %v3874_v58  ;;  %v4264_v59 = vld [vmem:[%s5610_s19] ss:$0 sm:$0xff] }
0x1ff6   :  { %v3883_v0 = vadd.f32 %v3881_v61, %v3871_v42  ;;  %v3882_v1 = vmul.f32 0.044715, %v3880_v9 }
0x1ff8   :  { %v3885_v3 = vmul.f32 0.7978846, %v3883_v0  ;;  %v3884_v2 = vadd.f32 %v3882_v1, %v3874_v58 }
0x1ffa   :  { %4839 = vtanh.f32 %v3885_v3  ;;  %v3886_v4 = vmul.f32 0.7978846, %v3884_v2 }
0x1ffc   :  { %4841 = vtanh.f32 %v3886_v4 }
0x2004   :  { %v4840_v8 = vpop.eup %4839 }
0x2005   :  { %v3889_v10 = vadd.f32 1.0, %v4840_v8 }
0x2006   :  { %v4842_v11 = vpop.eup %4841 }
0x2007   :  { %v3891_v12 = vmul.f32 0.5, %v3889_v10  ;;  %v3890_v13 = vadd.f32 1.0, %v4842_v11 }
0x2009   :  { %v3892_v7 = vmul.f32 0.5, %v3890_v13  ;;  %v3893_v16 = vmul.f32 %v3891_v12, %v3871_v42 }
0x200b   :  { %v3894_v17 = vmul.f32 %v3892_v7, %v3874_v58 }
0x200d   :  { %v3895_v18 = vpack.c.bf16 %v3894_v17, %v3893_v16 }
0x200f   :  { %4678 = vmatmul.mubr.msk.bf16.vlgmr.msra.gmra.mrb[64].mxu1 %vm2051_vm7, %v3895_v18 }
0x20e2   :  { %v3974_v22 = vpop.f32.mrb[64].mxu1 }
0x20e3   :  { %v3975_v24 = vadd.f32 %v4254_v20, %v3974_v22  ;;  %v4679_v25 = vpop.f32.mrb[65].mxu1 }
0x20e4   :  { %v3977_v26 = vpop.f32.mrb[66].mxu1 }
0x20e5   :  { %v3978_v28 = vadd.f32 %v4254_v20, %v3977_v26  ;;  %v4680_v29 = vpop.f32.mrb[67].mxu1  ;;  %v3981_v30 = vadd.f32 %v3975_v24, %v3805_v19 }
0x20e7   :  { %v3982_v32 = vadd.f32 %v3978_v28, %v3806_v21  ;;  %v3987_v33 = vsel %vm184_vm4, %v3981_v30, 0.0 }
0x20e8   :  { %3988 = vadd.xlane.f32.xlu0 %v3987_v33 }
0x20e9   :  { %v3990_v34 = vsel %vm184_vm4, %v3982_v32, 0.0 }
0x20ea   :  { %3991 = vadd.xlane.f32.xlu1 %v3990_v34 }
0x2175   :  { %v3989_v35 = vpop.xlane.xlu0 %3988 }
0x2176   :  { %v3993_v23 = vmul.f32 0.03125, %v3989_v35 }
0x2177   :  { %v3992_v36 = vpop.xlane.xlu1 %3991 }
0x2178   :  { %v3995_v5 = vsub.f32 %v3981_v30, %v3993_v23  ;;  %v3994_v6 = vmul.f32 0.03125, %v3992_v36 }
0x217a   :  { %v3996_v37 = vsub.f32 %v3982_v32, %v3994_v6  ;;  %v3997_v27 = vmul.f32 %v3995_v5, %v3995_v5 }
0x217c   :  { %v3999_v38 = vsel %vm184_vm4, %v3997_v27, 0.0  ;;  %v3998_v39 = vmul.f32 %v3996_v37, %v3996_v37 }
0x217d   :  { %4000 = vadd.xlane.f32.xlu0 %v3999_v38 }
0x217e   :  { %v4002_v40 = vsel %vm184_vm4, %v3998_v39, 0.0 }
0x217f   :  { %4003 = vadd.xlane.f32.xlu1 %v4002_v40 }
0x220a   :  { %v4001_v45 = vpop.xlane.xlu0 %4000 }
0x220b   :  { %v4005_v46 = vmul.f32 0.03125, %v4001_v45 }
0x220c   :  { %v4004_v47 = vpop.xlane.xlu1 %4003 }
0x220d   :  { %v4007_v19 = vadd.f32 1e-12, %v4005_v46  ;;  %v4006_v21 = vmul.f32 0.03125, %v4004_v47 }
0x220f   :  { %4843 = vrsqrt.f32 %v4007_v19  ;;  %v4008_v48 = vadd.f32 1e-12, %v4006_v21 }
0x2211   :  { %4845 = vrsqrt.f32 %v4008_v48 }
0x2219   :  { %v4844_v49 = vpop.eup %4843 }
0x221a   :  { %v4011_v50 = vmul.f32 %v4844_v49, %v3995_v5 }
0x221b   :  { %v4846_v51 = vpop.eup %4845 }
0x221c   :  { %v4012_v53 = vmul.f32 %v4846_v51, %v3996_v37  ;;  %v4019_v54 = vmul.f32 %v4262_v52, %v4011_v50 }
0x221e   :  { %v4020_v42 = vmul.f32 %v4262_v52, %v4012_v53  ;;  %v4027_v57 = vadd.f32 %v4263_v55, %v4019_v54 }
0x2220   :  { %v4028_v56 = vadd.f32 %v4263_v55, %v4020_v42 }
0x2222   :  { %v4030_v58 = vrot.slane %v4028_v56, 7 }
0x2224   :  { %v4033_v15 = vsel %vm4032_vm8, %v4027_v57, %v4030_v58 }
0x2225   :  { %4690 = vmatmul.mubr.msk.f32.vlgmr.msra.gmra.mrb[56].mxu0 %vm184_vm4, %v4033_v15 }
0x22f8   :  { %v4114_v60 = vpop.f32.mrb[56].mxu0 }
0x22f9   :  { %v4115_v61 = vadd.f32 %v4264_v59, %v4114_v60  ;;  %v4691_v9 = vpop.f32.mrb[57].mxu0 }
0x22fb   :  { %v4119_v0 = vrot.slane %v4115_v61, 6  ;;  %v4121_v1 = vrot.slane %v4115_v61, 4  ;;  %v4123_v3 = vrot.slane %v4115_v61, 2 }
0x22fd   :  { %v4126_v2 = vsel %vm4125_vm9, %v4115_v61, %v4119_v0 }
0x22fe   :  { %v4127_v4 = vsel %vm103_vm0, %v4126_v2, %v4121_v1 }
0x22ff   :  { %v4129_v8 = vsel %vm4128_vm10, %v4127_v4, %v4123_v3 }
0x2300   :  { %4130 = vst [vmem:[%s5611_s20] sm:$0xff] %v4129_v8 }

</bundles_post_ra>
